<compile_context>
chip_gen: v7x
topology: tpu7x:2x2x1
jax: 0.10.0
libtpu: 0.0.40
codegen_flags: <defaults>
</compile_context>

<pallas_src>
import functools

import jax
import jax.numpy as jnp
import numpy as np
from jax import lax
from jax.experimental import pallas as pl
from jax.experimental.pallas import tpu as pltpu

LANE = 128


def _round_up(n, m):
    return ((n + m - 1) // m) * m


# --------------------------------------------------------------------------
# Fused Pallas kernel
# --------------------------------------------------------------------------

def _fused_block_kernel(x_ref, w1_ref, b1_ref, w2_ref, b2_ref, w3_ref, b3_ref,
                        o_ref, h1_ref, *,
                        stride, dilation, pad, H, W, Th, Wo, use_res):
    """One (batch, output-row-tile) step of expand -> depthwise -> project.

    x_ref : (1, Hp, Wp, Cin_p)  spatially pre-padded input image, VMEM resident
                                across all row tiles of this batch element
    w*_ref: BN-folded weights / biases (channels padded to lane multiples)
    o_ref : (1, Th, Wo, Cout_p) output row tile
    h1_ref: (Th_in, Wp, Cexp_p) VMEM scratch for the expanded+ReLU activation of
                                this tile's input window (halo included); the
                                expanded tensor never touches HBM.
    """
    r = pl.program_id(1)
    d = dilation
    Wp = x_ref.shape[2]
    cexp_p = w1_ref.shape[1]
    th_in = (Th - 1) * stride + 2 * d + 1      # input rows needed (incl. halo)
    hf = th_in - 2 * d                         # = (Th-1)*stride + 1
    wf = Wp - 2 * d                            # = W (full-res width pre-stride)

    r0 = r * (Th * stride)                     # first padded input row of tile

    w1 = w1_ref[...]
    b1 = b1_ref[...]
    w2 = w2_ref[...]
    b2 = b2_ref[0]
    w3 = w3_ref[...]
    b3 = b3_ref[...]

    # ---- stage 1: 1x1 expand + bias + ReLU -> VMEM scratch ------------------
    x_win = x_ref[0, pl.ds(r0, th_in), :, :]   # (th_in, Wp, Cin_p)
    col = lax.broadcasted_iota(jnp.int32, (Wp, 1), 0)
    col_ok = jnp.logical_and(col >= pad, col < pad + W)   # hoisted out of loop
    for t in range(th_in):
        h = jnp.dot(x_win[t], w1, preferred_element_type=jnp.float32) + b1
        h = jnp.maximum(h, 0.0)
        # The reference zero-pads *after* expand+ReLU, so halo rows/cols must be
        # exactly 0 (not ReLU(bias)).
        row_ok = jnp.logical_and(r0 + t >= pad, r0 + t < pad + H)
        h1_ref[t] = jnp.where(jnp.logical_and(col_ok, row_ok), h, 0.0)

    # ---- stage 2: 3x3 depthwise (stride/dilation) + bias + ReLU --------------
    acc = None
    for kh in range(3):
        for kw in range(3):
            patch = h1_ref[kh * d:kh * d + hf, kw * d:kw * d + wf, :]
            term = patch * w2[kh, kw]
            acc = term if acc is None else acc + term     # first tap inits acc
    if stride > 1:
        # one strided subsample instead of 9 strided sublane slices
        acc = lax.slice(acc, (0, 0, 0), (hf, wf, cexp_p), (stride, stride, 1))
    h2 = jnp.maximum(acc + b2, 0.0)            # (Th, Wo, cexp_p)

    # ---- stage 3: 1x1 project + bias (+ residual) ----------------------------
    if use_res:
        # stride == 1 here; residual rows live at padded rows [r0+pad, r0+pad+Th)
        # of the VMEM-resident input block, columns [pad, pad + W).
        x_res = x_ref[0, pl.ds(r0 + pad, Th), pl.ds(pad, W), :]
    for q in range(Th):
        y = jnp.dot(h2[q], w3, preferred_element_type=jnp.float32) + b3
        if use_res:
            y = y + x_res[q]
        o_ref[0, q] = y.astype(o_ref.dtype)


# --------------------------------------------------------------------------
# Wrapper
# --------------------------------------------------------------------------

def _choose_row_tile(Ho, Wp, cexp_p, stride, dilation, budget_bytes=4 << 20):
    """Largest output-row tile Th that divides Ho, keeps >= 4 row tiles per
    image when possible (pipelining / megacore), and keeps the expanded VMEM
    scratch under budget (sized conservatively for v7x's 64 MiB VMEM)."""
    cap = max(1, min(Ho // 4, 16))
    best = 1
    for th in range(1, cap + 1):
        if Ho % th:
            continue
        th_in = (th - 1) * stride + 2 * dilation + 1
        if th_in * Wp * cexp_p * 4 <= budget_bytes:
            best = th
    return best


def fold_and_pad_params(params):
    """One-time host-side prep: fold BN scales into the conv weights and pad
    every channel dim up to a multiple of 128 (lane-dense matmuls/stores)."""
    inp, cexp = params["w1"].shape
    oup = params["w3"].shape[1]
    cin_p = _round_up(inp, LANE)
    cexp_p = _round_up(cexp, LANE)
    cout_p = _round_up(oup, LANE)

    def pad_to(a, shape):
        return jnp.pad(a, [(0, t - s) for s, t in zip(a.shape, shape)])

    return dict(
        w1=pad_to(params["w1"] * params["s1"], (cin_p, cexp_p)),
        b1=pad_to(params["b1"], (1, cexp_p)),
        w2=pad_to(params["w2"] * params["s2"][0], (3, 3, cexp_p)),
        b2=pad_to(params["b2"], (1, cexp_p)),
        w3=pad_to(params["w3"] * params["s3"], (cexp_p, cout_p)),
        b3=pad_to(params["b3"], (1, cout_p)),
        inp=inp, oup=oup, cexp=cexp,
        cin_p=cin_p, cexp_p=cexp_p, cout_p=cout_p,
    )


def inverted_residual_forward(x_nchw, kp, *, stride, dilation=1):
    assert stride in (1, 2)
    inp, oup = kp["inp"], kp["oup"]
    cin_p, cexp_p, cout_p = kp["cin_p"], kp["cexp_p"], kp["cout_p"]
    use_res = (stride == 1) and (inp == oup)
    if use_res:
        assert cin_p == cout_p

    # NCHW -> NHWC at the module boundary only (C on the 128-lane axis).
    # TODO(synk): keep NHWC end-to-end when chaining blocks to drop these
    # boundary transposes entirely.
    x = jnp.transpose(x_nchw, (0, 2, 3, 1))
    N, H, W, _ = x.shape
    pad = dilation
    Hp, Wp = H + 2 * pad, W + 2 * pad
    Ho = (H - 1) // stride + 1
    Wo = (W - 1) // stride + 1

    # Spatial zero-pad only the small un-expanded input, and pad channels to a
    # lane multiple; the 6x-expanded activation is never padded / sent to HBM.
    xp = jnp.pad(x, ((0, 0), (pad, pad), (pad, pad), (0, cin_p - inp)))

    Th = _choose_row_tile(Ho, Wp, cexp_p, stride, dilation)
    th_in = (Th - 1) * stride + 2 * dilation + 1
    grid = (N, Ho // Th)

    kernel = functools.partial(
        _fused_block_kernel, stride=stride, dilation=dilation, pad=pad,
        H=H, W=W, Th=Th, Wo=Wo, use_res=use_res)

    out = pl.pallas_call(
        kernel,
        out_shape=jax.ShapeDtypeStruct((N, Ho, Wo, cout_p), x.dtype),
        grid=grid,
        in_specs=[
            # whole padded image of batch n: block index depends only on n, so
            # it stays VMEM-resident across all row tiles of that image.
            pl.BlockSpec((1, Hp, Wp, cin_p), lambda n, r: (n, 0, 0, 0)),
            pl.BlockSpec((cin_p, cexp_p), lambda n, r: (0, 0)),
            pl.BlockSpec((1, cexp_p), lambda n, r: (0, 0)),
            pl.BlockSpec((3, 3, cexp_p), lambda n, r: (0, 0, 0)),
            pl.BlockSpec((1, cexp_p), lambda n, r: (0, 0)),
            pl.BlockSpec((cexp_p, cout_p), lambda n, r: (0, 0)),
            pl.BlockSpec((1, cout_p), lambda n, r: (0, 0)),
        ],
        out_specs=pl.BlockSpec((1, Th, Wo, cout_p), lambda n, r: (n, r, 0, 0)),
        scratch_shapes=[pltpu.VMEM((th_in, Wp, cexp_p), jnp.float32)],
        compiler_params=pltpu.CompilerParams(
            dimension_semantics=("parallel", "arbitrary"),
            # explicit budget; tiles chosen to stay well under v7x's 64 MiB
            # physical VMEM (32 MiB scoped), also fine on v5e/v6e.
            vmem_limit_bytes=32 * 1024 * 1024),
    )(xp, kp["w1"], kp["b1"], kp["w2"], kp["b2"], kp["w3"], kp["b3"])

    y = out[..., :oup]                          # strip channel padding
    return jnp.transpose(y, (0, 3, 1, 2))       # NHWC -> NCHW


# --------------------------------------------------------------------------
# Parameter init (PyTorch-equivalent) + pure-JAX reference
# --------------------------------------------------------------------------

def init_params(key, inp, oup, expand_ratio):
    cexp = inp * expand_ratio
    ks = jax.random.split(key, 15)

    def bn_fold(kg, kb, km, kv, c):
        gamma = jax.random.uniform(kg, (c,), jnp.float32, 0.5, 1.5)
        beta = jax.random.normal(kb, (c,), jnp.float32) * 0.1
        mean = jax.random.normal(km, (c,), jnp.float32) * 0.1
        var = jax.random.uniform(kv, (c,), jnp.float32, 0.5, 1.5)
        scale = gamma / jnp.sqrt(var + 1e-5)
        bias = beta - mean * scale
        return scale.reshape(1, c), bias.reshape(1, c)

    # PyTorch conv weight (Cout, Cin, 1, 1) -> (Cin, Cout) for the 1x1 convs,
    # (Cexp, 1, 3, 3) -> (3, 3, Cexp) for the depthwise conv.
    w1 = jax.random.normal(ks[0], (inp, cexp), jnp.float32) * 0.2
    w2 = jax.random.normal(ks[1], (3, 3, cexp), jnp.float32) * 0.2
    w3 = jax.random.normal(ks[2], (cexp, oup), jnp.float32) * 0.2
    s1, b1 = bn_fold(ks[3], ks[4], ks[5], ks[6], cexp)
    s2, b2 = bn_fold(ks[7], ks[8], ks[9], ks[10], cexp)
    s3, b3 = bn_fold(ks[11], ks[12], ks[13], ks[14], oup)
    return dict(w1=w1, w2=w2, w3=w3, s1=s1, b1=b1, s2=s2, b2=b2, s3=s3, b3=b3)


def inverted_residual_ref(x_nchw, params, *, stride, dilation=1):
    inp = x_nchw.shape[1]
    oup = params["w3"].shape[1]
    cexp = params["w1"].shape[1]
    use_res = (stride == 1) and (inp == oup)
    x = jnp.transpose(x_nchw, (0, 2, 3, 1))
    N, H, W, _ = x.shape

    h1 = jnp.maximum(x.reshape(-1, inp) @ params["w1"] * params["s1"]
                     + params["b1"], 0.0).reshape(N, H, W, cexp)
    pad = dilation
    h2 = lax.conv_general_dilated(
        h1, params["w2"].reshape(3, 3, 1, cexp),
        window_strides=(stride, stride),
        padding=[(pad, pad), (pad, pad)],
        rhs_dilation=(dilation, dilation),
        dimension_numbers=("NHWC", "HWIO", "NHWC"),
        feature_group_count=cexp)
    h2 = jnp.maximum(h2 * params["s2"] + params["b2"], 0.0)
    _, Ho, Wo, _ = h2.shape
    y = (h2.reshape(-1, cexp) @ params["w3"] * params["s3"]
         + params["b3"]).reshape(N, Ho, Wo, oup)
    if use_res:
        y = y + x
    return jnp.transpose(y, (0, 3, 1, 2))


# --------------------------------------------------------------------------

if __name__ == "__main__":
    key = jax.random.PRNGKey(0)
    k_x, k_p = jax.random.split(key)

    # Small config: inp == oup, stride 1 -> the residual branch is exercised.
    N, inp, oup, H, W = 2, 4, 4, 16, 16
    stride, expand_ratio, dilation = 1, 6, 1

    x = jax.random.normal(k_x, (N, inp, H, W), jnp.float32)
    params = init_params(k_p, inp, oup, expand_ratio)
    kparams = fold_and_pad_params(params)   # one-time: fold BN + lane-pad

    out = inverted_residual_forward(x, kparams, stride=stride,
                                    dilation=dilation)
    out = jax.block_until_ready(out)

    ref = jax.block_until_ready(
        inverted_residual_ref(x, params, stride=stride, dilation=dilation))
    np.testing.assert_allclose(np.asarray(out), np.asarray(ref),
                               rtol=1e-3, atol=1e-3)

    assert out.shape == (N, oup, H // stride, W // stride)
    print("KERNEL_OK")
</pallas_src>

<mosaic_0001>
module attributes {stable_mosaic.version = 11 : i64} {
  func.func @_fused_block_kernel(%arg0: i32, %arg1: i32, %arg2: memref<1x18x18x128xf32, #tpu.memory_space<vmem>>, %arg3: memref<128x128xf32, #tpu.memory_space<vmem>>, %arg4: memref<1x128xf32, #tpu.memory_space<vmem>>, %arg5: memref<3x3x128xf32, #tpu.memory_space<vmem>>, %arg6: memref<1x128xf32, #tpu.memory_space<vmem>>, %arg7: memref<128x128xf32, #tpu.memory_space<vmem>>, %arg8: memref<1x128xf32, #tpu.memory_space<vmem>>, %arg9: memref<1x4x16x128xf32, #tpu.memory_space<vmem>>, %arg10: memref<6x18x128xf32, #tpu.memory_space<vmem>>) attributes {dimension_semantics = [#tpu.dimension_semantics<parallel>, #tpu.dimension_semantics<arbitrary>], iteration_bounds = array<i64: 2, 4>, scalar_prefetch = 0 : i64, scratch_operands = 1 : i64, tpu.core_type = #tpu.core_type<tc>, window_params = [{transform_indices = @transform_0, window_bounds = array<i64: 1, 18, 18, 128>}, {pipeline_mode = #tpu.pipeline_mode<synchronous>, transform_indices = @transform_1, window_bounds = array<i64: 128, 128>}, {pipeline_mode = #tpu.pipeline_mode<synchronous>, transform_indices = @transform_2, window_bounds = array<i64: 1, 128>}, {pipeline_mode = #tpu.pipeline_mode<synchronous>, transform_indices = @transform_3, window_bounds = array<i64: 3, 3, 128>}, {pipeline_mode = #tpu.pipeline_mode<synchronous>, transform_indices = @transform_4, window_bounds = array<i64: 1, 128>}, {pipeline_mode = #tpu.pipeline_mode<synchronous>, transform_indices = @transform_5, window_bounds = array<i64: 128, 128>}, {pipeline_mode = #tpu.pipeline_mode<synchronous>, transform_indices = @transform_6, window_bounds = array<i64: 1, 128>}, {transform_indices = @transform_7, window_bounds = array<i64: 1, 4, 16, 128>}]} {
    %c4_i32 = arith.constant 4 : i32
    %0 = arith.muli %arg1, %c4_i32 : i32
    %c0 = arith.constant 0 : index
    %c0_0 = arith.constant 0 : index
    %1 = vector.load %arg3[%c0, %c0_0] : memref<128x128xf32, #tpu.memory_space<vmem>>, vector<128x128xf32>
    %c0_1 = arith.constant 0 : index
    %c0_2 = arith.constant 0 : index
    %2 = vector.load %arg4[%c0_1, %c0_2] : memref<1x128xf32, #tpu.memory_space<vmem>>, vector<1x128xf32>
    %c0_3 = arith.constant 0 : index
    %c0_4 = arith.constant 0 : index
    %c0_5 = arith.constant 0 : index
    %3 = vector.load %arg5[%c0_3, %c0_4, %c0_5] : memref<3x3x128xf32, #tpu.memory_space<vmem>>, vector<3x3x128xf32>
    %c0_6 = arith.constant 0 : index
    %c0_7 = arith.constant 0 : index
    %4 = vector.load %arg6[%c0_6, %c0_7] : memref<1x128xf32, #tpu.memory_space<vmem>>, vector<1x128xf32>
    %5 = vector.shape_cast %4 : vector<1x128xf32> to vector<128xf32>
    %c0_8 = arith.constant 0 : index
    %c0_9 = arith.constant 0 : index
    %6 = vector.load %arg7[%c0_8, %c0_9] : memref<128x128xf32, #tpu.memory_space<vmem>>, vector<128x128xf32>
    %c0_10 = arith.constant 0 : index
    %c0_11 = arith.constant 0 : index
    %7 = vector.load %arg8[%c0_10, %c0_11] : memref<1x128xf32, #tpu.memory_space<vmem>>, vector<1x128xf32>
    %c0_12 = arith.constant 0 : index
    %8 = arith.index_cast %0 : i32 to index
    %c0_13 = arith.constant 0 : index
    %c0_14 = arith.constant 0 : index
    %9 = vector.load %arg2[%c0_12, %8, %c0_13, %c0_14] : memref<1x18x18x128xf32, #tpu.memory_space<vmem>>, vector<1x6x18x128xf32>
    %10 = vector.shape_cast %9 : vector<1x6x18x128xf32> to vector<6x18x128xf32>
    %11 = tpu.iota {dimensions = array<i32: 0>} : vector<18x1xi32>
    %c1_i32 = arith.constant 1 : i32
    %12 = vector.broadcast %c1_i32 : i32 to vector<18x1xi32>
    %13 = arith.cmpi sge, %11, %12 : vector<18x1xi32>
    %c17_i32 = arith.constant 17 : i32
    %14 = vector.broadcast %c17_i32 : i32 to vector<18x1xi32>
    %15 = arith.cmpi slt, %11, %14 : vector<18x1xi32>
    %16 = arith.andi %13, %15 : vector<18x1xi1>
    %17 = vector.extract_strided_slice %10 {offsets = [0, 0, 0], sizes = [1, 18, 128], strides = [1, 1, 1]} : vector<6x18x128xf32> to vector<1x18x128xf32>
    %18 = vector.shape_cast %17 : vector<1x18x128xf32> to vector<18x128xf32>
    %cst = arith.constant dense<0.000000e+00> : vector<18x128xf32>
    %19 = tpu.matmul %18, %1, %cst {dimension_numbers = #tpu.dot_dimension_numbers<[1], [0], [0], [1], [0, 0, 1, 1], [], []>} : vector<18x128xf32>, vector<128x128xf32>, vector<18x128xf32> -> vector<18x128xf32>
    %20 = vector.broadcast %2 : vector<1x128xf32> to vector<18x128xf32>
    %21 = arith.addf %19, %20 : vector<18x128xf32>
    %cst_15 = arith.constant 0.000000e+00 : f32
    %22 = vector.broadcast %cst_15 : f32 to vector<18x128xf32>
    %23 = arith.maximumf %21, %22 : vector<18x128xf32>
    %c0_i32 = arith.constant 0 : i32
    %24 = arith.addi %0, %c0_i32 : i32
    %c1_i32_16 = arith.constant 1 : i32
    %25 = arith.cmpi sge, %24, %c1_i32_16 : i32
    %c0_i32_17 = arith.constant 0 : i32
    %26 = arith.addi %0, %c0_i32_17 : i32
    %c17_i32_18 = arith.constant 17 : i32
    %27 = arith.cmpi slt, %26, %c17_i32_18 : i32
    %28 = arith.andi %25, %27 : i1
    %29 = vector.broadcast %28 : i1 to vector<18x1xi1>
    %30 = arith.andi %16, %29 : vector<18x1xi1>
    %cst_19 = arith.constant 0.000000e+00 : f32
    %31 = vector.shape_cast %30 : vector<18x1xi1> to vector<18x1xi1>
    %32 = vector.broadcast %31 : vector<18x1xi1> to vector<18x128xi1>
    %33 = vector.broadcast %cst_19 : f32 to vector<18x128xf32>
    %34 = arith.select %32, %23, %33 : vector<18x128xi1>, vector<18x128xf32>
    %c0_20 = arith.constant 0 : index
    %c0_21 = arith.constant 0 : index
    %c0_22 = arith.constant 0 : index
    %35 = vector.load %arg10[%c0_20, %c0_21, %c0_22] : memref<6x18x128xf32, #tpu.memory_space<vmem>>, vector<1x18x128xf32>
    %36 = vector.shape_cast %35 : vector<1x18x128xf32> to vector<18x128xf32>
    %37 = vector.shape_cast %34 : vector<18x128xf32> to vector<1x18x128xf32>
    tpu.vector_store %arg10[%c0_20, %c0_21, %c0_22], %37 {strides = array<i32>} : memref<6x18x128xf32, #tpu.memory_space<vmem>>, vector<1x18x128xf32>,
    %38 = vector.extract_strided_slice %10 {offsets = [1, 0, 0], sizes = [1, 18, 128], strides = [1, 1, 1]} : vector<6x18x128xf32> to vector<1x18x128xf32>
    %39 = vector.shape_cast %38 : vector<1x18x128xf32> to vector<18x128xf32>
    %cst_23 = arith.constant dense<0.000000e+00> : vector<18x128xf32>
    %40 = tpu.matmul %39, %1, %cst_23 {dimension_numbers = #tpu.dot_dimension_numbers<[1], [0], [0], [1], [0, 0, 1, 1], [], []>} : vector<18x128xf32>, vector<128x128xf32>, vector<18x128xf32> -> vector<18x128xf32>
    %41 = vector.broadcast %2 : vector<1x128xf32> to vector<18x128xf32>
    %42 = arith.addf %40, %41 : vector<18x128xf32>
    %cst_24 = arith.constant 0.000000e+00 : f32
    %43 = vector.broadcast %cst_24 : f32 to vector<18x128xf32>
    %44 = arith.maximumf %42, %43 : vector<18x128xf32>
    %c1_i32_25 = arith.constant 1 : i32
    %45 = arith.addi %0, %c1_i32_25 : i32
    %c1_i32_26 = arith.constant 1 : i32
    %46 = arith.cmpi sge, %45, %c1_i32_26 : i32
    %c1_i32_27 = arith.constant 1 : i32
    %47 = arith.addi %0, %c1_i32_27 : i32
    %c17_i32_28 = arith.constant 17 : i32
    %48 = arith.cmpi slt, %47, %c17_i32_28 : i32
    %49 = arith.andi %46, %48 : i1
    %50 = vector.broadcast %49 : i1 to vector<18x1xi1>
    %51 = arith.andi %16, %50 : vector<18x1xi1>
    %cst_29 = arith.constant 0.000000e+00 : f32
    %52 = vector.shape_cast %51 : vector<18x1xi1> to vector<18x1xi1>
    %53 = vector.broadcast %52 : vector<18x1xi1> to vector<18x128xi1>
    %54 = vector.broadcast %cst_29 : f32 to vector<18x128xf32>
    %55 = arith.select %53, %44, %54 : vector<18x128xi1>, vector<18x128xf32>
    %c1 = arith.constant 1 : index
    %c0_30 = arith.constant 0 : index
    %c0_31 = arith.constant 0 : index
    %56 = vector.load %arg10[%c1, %c0_30, %c0_31] : memref<6x18x128xf32, #tpu.memory_space<vmem>>, vector<1x18x128xf32>
    %57 = vector.shape_cast %56 : vector<1x18x128xf32> to vector<18x128xf32>
    %58 = vector.shape_cast %55 : vector<18x128xf32> to vector<1x18x128xf32>
    tpu.vector_store %arg10[%c1, %c0_30, %c0_31], %58 {strides = array<i32>} : memref<6x18x128xf32, #tpu.memory_space<vmem>>, vector<1x18x128xf32>,
    %59 = vector.extract_strided_slice %10 {offsets = [2, 0, 0], sizes = [1, 18, 128], strides = [1, 1, 1]} : vector<6x18x128xf32> to vector<1x18x128xf32>
    %60 = vector.shape_cast %59 : vector<1x18x128xf32> to vector<18x128xf32>
    %cst_32 = arith.constant dense<0.000000e+00> : vector<18x128xf32>
    %61 = tpu.matmul %60, %1, %cst_32 {dimension_numbers = #tpu.dot_dimension_numbers<[1], [0], [0], [1], [0, 0, 1, 1], [], []>} : vector<18x128xf32>, vector<128x128xf32>, vector<18x128xf32> -> vector<18x128xf32>
    %62 = vector.broadcast %2 : vector<1x128xf32> to vector<18x128xf32>
    %63 = arith.addf %61, %62 : vector<18x128xf32>
    %cst_33 = arith.constant 0.000000e+00 : f32
    %64 = vector.broadcast %cst_33 : f32 to vector<18x128xf32>
    %65 = arith.maximumf %63, %64 : vector<18x128xf32>
    %c2_i32 = arith.constant 2 : i32
    %66 = arith.addi %0, %c2_i32 : i32
    %c1_i32_34 = arith.constant 1 : i32
    %67 = arith.cmpi sge, %66, %c1_i32_34 : i32
    %c2_i32_35 = arith.constant 2 : i32
    %68 = arith.addi %0, %c2_i32_35 : i32
    %c17_i32_36 = arith.constant 17 : i32
    %69 = arith.cmpi slt, %68, %c17_i32_36 : i32
    %70 = arith.andi %67, %69 : i1
    %71 = vector.broadcast %70 : i1 to vector<18x1xi1>
    %72 = arith.andi %16, %71 : vector<18x1xi1>
    %cst_37 = arith.constant 0.000000e+00 : f32
    %73 = vector.shape_cast %72 : vector<18x1xi1> to vector<18x1xi1>
    %74 = vector.broadcast %73 : vector<18x1xi1> to vector<18x128xi1>
    %75 = vector.broadcast %cst_37 : f32 to vector<18x128xf32>
    %76 = arith.select %74, %65, %75 : vector<18x128xi1>, vector<18x128xf32>
    %c2 = arith.constant 2 : index
    %c0_38 = arith.constant 0 : index
    %c0_39 = arith.constant 0 : index
    %77 = vector.load %arg10[%c2, %c0_38, %c0_39] : memref<6x18x128xf32, #tpu.memory_space<vmem>>, vector<1x18x128xf32>
    %78 = vector.shape_cast %77 : vector<1x18x128xf32> to vector<18x128xf32>
    %79 = vector.shape_cast %76 : vector<18x128xf32> to vector<1x18x128xf32>
    tpu.vector_store %arg10[%c2, %c0_38, %c0_39], %79 {strides = array<i32>} : memref<6x18x128xf32, #tpu.memory_space<vmem>>, vector<1x18x128xf32>,
    %80 = vector.extract_strided_slice %10 {offsets = [3, 0, 0], sizes = [1, 18, 128], strides = [1, 1, 1]} : vector<6x18x128xf32> to vector<1x18x128xf32>
    %81 = vector.shape_cast %80 : vector<1x18x128xf32> to vector<18x128xf32>
    %cst_40 = arith.constant dense<0.000000e+00> : vector<18x128xf32>
    %82 = tpu.matmul %81, %1, %cst_40 {dimension_numbers = #tpu.dot_dimension_numbers<[1], [0], [0], [1], [0, 0, 1, 1], [], []>} : vector<18x128xf32>, vector<128x128xf32>, vector<18x128xf32> -> vector<18x128xf32>
    %83 = vector.broadcast %2 : vector<1x128xf32> to vector<18x128xf32>
    %84 = arith.addf %82, %83 : vector<18x128xf32>
    %cst_41 = arith.constant 0.000000e+00 : f32
    %85 = vector.broadcast %cst_41 : f32 to vector<18x128xf32>
    %86 = arith.maximumf %84, %85 : vector<18x128xf32>
    %c3_i32 = arith.constant 3 : i32
    %87 = arith.addi %0, %c3_i32 : i32
    %c1_i32_42 = arith.constant 1 : i32
    %88 = arith.cmpi sge, %87, %c1_i32_42 : i32
    %c3_i32_43 = arith.constant 3 : i32
    %89 = arith.addi %0, %c3_i32_43 : i32
    %c17_i32_44 = arith.constant 17 : i32
    %90 = arith.cmpi slt, %89, %c17_i32_44 : i32
    %91 = arith.andi %88, %90 : i1
    %92 = vector.broadcast %91 : i1 to vector<18x1xi1>
    %93 = arith.andi %16, %92 : vector<18x1xi1>
    %cst_45 = arith.constant 0.000000e+00 : f32
    %94 = vector.shape_cast %93 : vector<18x1xi1> to vector<18x1xi1>
    %95 = vector.broadcast %94 : vector<18x1xi1> to vector<18x128xi1>
    %96 = vector.broadcast %cst_45 : f32 to vector<18x128xf32>
    %97 = arith.select %95, %86, %96 : vector<18x128xi1>, vector<18x128xf32>
    %c3 = arith.constant 3 : index
    %c0_46 = arith.constant 0 : index
    %c0_47 = arith.constant 0 : index
    %98 = vector.load %arg10[%c3, %c0_46, %c0_47] : memref<6x18x128xf32, #tpu.memory_space<vmem>>, vector<1x18x128xf32>
    %99 = vector.shape_cast %98 : vector<1x18x128xf32> to vector<18x128xf32>
    %100 = vector.shape_cast %97 : vector<18x128xf32> to vector<1x18x128xf32>
    tpu.vector_store %arg10[%c3, %c0_46, %c0_47], %100 {strides = array<i32>} : memref<6x18x128xf32, #tpu.memory_space<vmem>>, vector<1x18x128xf32>,
    %101 = vector.extract_strided_slice %10 {offsets = [4, 0, 0], sizes = [1, 18, 128], strides = [1, 1, 1]} : vector<6x18x128xf32> to vector<1x18x128xf32>
    %102 = vector.shape_cast %101 : vector<1x18x128xf32> to vector<18x128xf32>
    %cst_48 = arith.constant dense<0.000000e+00> : vector<18x128xf32>
    %103 = tpu.matmul %102, %1, %cst_48 {dimension_numbers = #tpu.dot_dimension_numbers<[1], [0], [0], [1], [0, 0, 1, 1], [], []>} : vector<18x128xf32>, vector<128x128xf32>, vector<18x128xf32> -> vector<18x128xf32>
    %104 = vector.broadcast %2 : vector<1x128xf32> to vector<18x128xf32>
    %105 = arith.addf %103, %104 : vector<18x128xf32>
    %cst_49 = arith.constant 0.000000e+00 : f32
    %106 = vector.broadcast %cst_49 : f32 to vector<18x128xf32>
    %107 = arith.maximumf %105, %106 : vector<18x128xf32>
    %c4_i32_50 = arith.constant 4 : i32
    %108 = arith.addi %0, %c4_i32_50 : i32
    %c1_i32_51 = arith.constant 1 : i32
    %109 = arith.cmpi sge, %108, %c1_i32_51 : i32
    %c4_i32_52 = arith.constant 4 : i32
    %110 = arith.addi %0, %c4_i32_52 : i32
    %c17_i32_53 = arith.constant 17 : i32
    %111 = arith.cmpi slt, %110, %c17_i32_53 : i32
    %112 = arith.andi %109, %111 : i1
    %113 = vector.broadcast %112 : i1 to vector<18x1xi1>
    %114 = arith.andi %16, %113 : vector<18x1xi1>
    %cst_54 = arith.constant 0.000000e+00 : f32
    %115 = vector.shape_cast %114 : vector<18x1xi1> to vector<18x1xi1>
    %116 = vector.broadcast %115 : vector<18x1xi1> to vector<18x128xi1>
    %117 = vector.broadcast %cst_54 : f32 to vector<18x128xf32>
    %118 = arith.select %116, %107, %117 : vector<18x128xi1>, vector<18x128xf32>
    %c4 = arith.constant 4 : index
    %c0_55 = arith.constant 0 : index
    %c0_56 = arith.constant 0 : index
    %119 = vector.load %arg10[%c4, %c0_55, %c0_56] : memref<6x18x128xf32, #tpu.memory_space<vmem>>, vector<1x18x128xf32>
    %120 = vector.shape_cast %119 : vector<1x18x128xf32> to vector<18x128xf32>
    %121 = vector.shape_cast %118 : vector<18x128xf32> to vector<1x18x128xf32>
    tpu.vector_store %arg10[%c4, %c0_55, %c0_56], %121 {strides = array<i32>} : memref<6x18x128xf32, #tpu.memory_space<vmem>>, vector<1x18x128xf32>,
    %122 = vector.extract_strided_slice %10 {offsets = [5, 0, 0], sizes = [1, 18, 128], strides = [1, 1, 1]} : vector<6x18x128xf32> to vector<1x18x128xf32>
    %123 = vector.shape_cast %122 : vector<1x18x128xf32> to vector<18x128xf32>
    %cst_57 = arith.constant dense<0.000000e+00> : vector<18x128xf32>
    %124 = tpu.matmul %123, %1, %cst_57 {dimension_numbers = #tpu.dot_dimension_numbers<[1], [0], [0], [1], [0, 0, 1, 1], [], []>} : vector<18x128xf32>, vector<128x128xf32>, vector<18x128xf32> -> vector<18x128xf32>
    %125 = vector.broadcast %2 : vector<1x128xf32> to vector<18x128xf32>
    %126 = arith.addf %124, %125 : vector<18x128xf32>
    %cst_58 = arith.constant 0.000000e+00 : f32
    %127 = vector.broadcast %cst_58 : f32 to vector<18x128xf32>
    %128 = arith.maximumf %126, %127 : vector<18x128xf32>
    %c5_i32 = arith.constant 5 : i32
    %129 = arith.addi %0, %c5_i32 : i32
    %c1_i32_59 = arith.constant 1 : i32
    %130 = arith.cmpi sge, %129, %c1_i32_59 : i32
    %c5_i32_60 = arith.constant 5 : i32
    %131 = arith.addi %0, %c5_i32_60 : i32
    %c17_i32_61 = arith.constant 17 : i32
    %132 = arith.cmpi slt, %131, %c17_i32_61 : i32
    %133 = arith.andi %130, %132 : i1
    %134 = vector.broadcast %133 : i1 to vector<18x1xi1>
    %135 = arith.andi %16, %134 : vector<18x1xi1>
    %cst_62 = arith.constant 0.000000e+00 : f32
    %136 = vector.shape_cast %135 : vector<18x1xi1> to vector<18x1xi1>
    %137 = vector.broadcast %136 : vector<18x1xi1> to vector<18x128xi1>
    %138 = vector.broadcast %cst_62 : f32 to vector<18x128xf32>
    %139 = arith.select %137, %128, %138 : vector<18x128xi1>, vector<18x128xf32>
    %c5 = arith.constant 5 : index
    %c0_63 = arith.constant 0 : index
    %c0_64 = arith.constant 0 : index
    %140 = vector.load %arg10[%c5, %c0_63, %c0_64] : memref<6x18x128xf32, #tpu.memory_space<vmem>>, vector<1x18x128xf32>
    %141 = vector.shape_cast %140 : vector<1x18x128xf32> to vector<18x128xf32>
    %142 = vector.shape_cast %139 : vector<18x128xf32> to vector<1x18x128xf32>
    tpu.vector_store %arg10[%c5, %c0_63, %c0_64], %142 {strides = array<i32>} : memref<6x18x128xf32, #tpu.memory_space<vmem>>, vector<1x18x128xf32>,
    %c0_65 = arith.constant 0 : index
    %c0_66 = arith.constant 0 : index
    %c0_67 = arith.constant 0 : index
    %143 = vector.load %arg10[%c0_65, %c0_66, %c0_67] : memref<6x18x128xf32, #tpu.memory_space<vmem>>, vector<4x16x128xf32>
    %144 = vector.extract_strided_slice %3 {offsets = [0, 0, 0], sizes = [1, 1, 128], strides = [1, 1, 1]} : vector<3x3x128xf32> to vector<1x1x128xf32>
    %145 = vector.shape_cast %144 : vector<1x1x128xf32> to vector<128xf32>
    %146 = vector.shape_cast %145 : vector<128xf32> to vector<1x1x128xf32>
    %147 = vector.broadcast %146 : vector<1x1x128xf32> to vector<4x16x128xf32>
    %148 = arith.mulf %143, %147 : vector<4x16x128xf32>
    %c0_68 = arith.constant 0 : index
    %c1_69 = arith.constant 1 : index
    %c0_70 = arith.constant 0 : index
    %149 = vector.load %arg10[%c0_68, %c1_69, %c0_70] : memref<6x18x128xf32, #tpu.memory_space<vmem>>, vector<4x16x128xf32>
    %150 = vector.extract_strided_slice %3 {offsets = [0, 1, 0], sizes = [1, 1, 128], strides = [1, 1, 1]} : vector<3x3x128xf32> to vector<1x1x128xf32>
    %151 = vector.shape_cast %150 : vector<1x1x128xf32> to vector<128xf32>
    %152 = vector.shape_cast %151 : vector<128xf32> to vector<1x1x128xf32>
    %153 = vector.broadcast %152 : vector<1x1x128xf32> to vector<4x16x128xf32>
    %154 = arith.mulf %149, %153 : vector<4x16x128xf32>
    %155 = arith.addf %148, %154 : vector<4x16x128xf32>
    %c0_71 = arith.constant 0 : index
    %c2_72 = arith.constant 2 : index
    %c0_73 = arith.constant 0 : index
    %156 = vector.load %arg10[%c0_71, %c2_72, %c0_73] : memref<6x18x128xf32, #tpu.memory_space<vmem>>, vector<4x16x128xf32>
    %157 = vector.extract_strided_slice %3 {offsets = [0, 2, 0], sizes = [1, 1, 128], strides = [1, 1, 1]} : vector<3x3x128xf32> to vector<1x1x128xf32>
    %158 = vector.shape_cast %157 : vector<1x1x128xf32> to vector<128xf32>
    %159 = vector.shape_cast %158 : vector<128xf32> to vector<1x1x128xf32>
    %160 = vector.broadcast %159 : vector<1x1x128xf32> to vector<4x16x128xf32>
    %161 = arith.mulf %156, %160 : vector<4x16x128xf32>
    %162 = arith.addf %155, %161 : vector<4x16x128xf32>
    %c1_74 = arith.constant 1 : index
    %c0_75 = arith.constant 0 : index
    %c0_76 = arith.constant 0 : index
    %163 = vector.load %arg10[%c1_74, %c0_75, %c0_76] : memref<6x18x128xf32, #tpu.memory_space<vmem>>, vector<4x16x128xf32>
    %164 = vector.extract_strided_slice %3 {offsets = [1, 0, 0], sizes = [1, 1, 128], strides = [1, 1, 1]} : vector<3x3x128xf32> to vector<1x1x128xf32>
    %165 = vector.shape_cast %164 : vector<1x1x128xf32> to vector<128xf32>
    %166 = vector.shape_cast %165 : vector<128xf32> to vector<1x1x128xf32>
    %167 = vector.broadcast %166 : vector<1x1x128xf32> to vector<4x16x128xf32>
    %168 = arith.mulf %163, %167 : vector<4x16x128xf32>
    %169 = arith.addf %162, %168 : vector<4x16x128xf32>
    %c1_77 = arith.constant 1 : index
    %c1_78 = arith.constant 1 : index
    %c0_79 = arith.constant 0 : index
    %170 = vector.load %arg10[%c1_77, %c1_78, %c0_79] : memref<6x18x128xf32, #tpu.memory_space<vmem>>, vector<4x16x128xf32>
    %171 = vector.extract_strided_slice %3 {offsets = [1, 1, 0], sizes = [1, 1, 128], strides = [1, 1, 1]} : vector<3x3x128xf32> to vector<1x1x128xf32>
    %172 = vector.shape_cast %171 : vector<1x1x128xf32> to vector<128xf32>
    %173 = vector.shape_cast %172 : vector<128xf32> to vector<1x1x128xf32>
    %174 = vector.broadcast %173 : vector<1x1x128xf32> to vector<4x16x128xf32>
    %175 = arith.mulf %170, %174 : vector<4x16x128xf32>
    %176 = arith.addf %169, %175 : vector<4x16x128xf32>
    %c1_80 = arith.constant 1 : index
    %c2_81 = arith.constant 2 : index
    %c0_82 = arith.constant 0 : index
    %177 = vector.load %arg10[%c1_80, %c2_81, %c0_82] : memref<6x18x128xf32, #tpu.memory_space<vmem>>, vector<4x16x128xf32>
    %178 = vector.extract_strided_slice %3 {offsets = [1, 2, 0], sizes = [1, 1, 128], strides = [1, 1, 1]} : vector<3x3x128xf32> to vector<1x1x128xf32>
    %179 = vector.shape_cast %178 : vector<1x1x128xf32> to vector<128xf32>
    %180 = vector.shape_cast %179 : vector<128xf32> to vector<1x1x128xf32>
    %181 = vector.broadcast %180 : vector<1x1x128xf32> to vector<4x16x128xf32>
    %182 = arith.mulf %177, %181 : vector<4x16x128xf32>
    %183 = arith.addf %176, %182 : vector<4x16x128xf32>
    %c2_83 = arith.constant 2 : index
    %c0_84 = arith.constant 0 : index
    %c0_85 = arith.constant 0 : index
    %184 = vector.load %arg10[%c2_83, %c0_84, %c0_85] : memref<6x18x128xf32, #tpu.memory_space<vmem>>, vector<4x16x128xf32>
    %185 = vector.extract_strided_slice %3 {offsets = [2, 0, 0], sizes = [1, 1, 128], strides = [1, 1, 1]} : vector<3x3x128xf32> to vector<1x1x128xf32>
    %186 = vector.shape_cast %185 : vector<1x1x128xf32> to vector<128xf32>
    %187 = vector.shape_cast %186 : vector<128xf32> to vector<1x1x128xf32>
    %188 = vector.broadcast %187 : vector<1x1x128xf32> to vector<4x16x128xf32>
    %189 = arith.mulf %184, %188 : vector<4x16x128xf32>
    %190 = arith.addf %183, %189 : vector<4x16x128xf32>
    %c2_86 = arith.constant 2 : index
    %c1_87 = arith.constant 1 : index
    %c0_88 = arith.constant 0 : index
    %191 = vector.load %arg10[%c2_86, %c1_87, %c0_88] : memref<6x18x128xf32, #tpu.memory_space<vmem>>, vector<4x16x128xf32>
    %192 = vector.extract_strided_slice %3 {offsets = [2, 1, 0], sizes = [1, 1, 128], strides = [1, 1, 1]} : vector<3x3x128xf32> to vector<1x1x128xf32>
    %193 = vector.shape_cast %192 : vector<1x1x128xf32> to vector<128xf32>
    %194 = vector.shape_cast %193 : vector<128xf32> to vector<1x1x128xf32>
    %195 = vector.broadcast %194 : vector<1x1x128xf32> to vector<4x16x128xf32>
    %196 = arith.mulf %191, %195 : vector<4x16x128xf32>
    %197 = arith.addf %190, %196 : vector<4x16x128xf32>
    %c2_89 = arith.constant 2 : index
    %c2_90 = arith.constant 2 : index
    %c0_91 = arith.constant 0 : index
    %198 = vector.load %arg10[%c2_89, %c2_90, %c0_91] : memref<6x18x128xf32, #tpu.memory_space<vmem>>, vector<4x16x128xf32>
    %199 = vector.extract_strided_slice %3 {offsets = [2, 2, 0], sizes = [1, 1, 128], strides = [1, 1, 1]} : vector<3x3x128xf32> to vector<1x1x128xf32>
    %200 = vector.shape_cast %199 : vector<1x1x128xf32> to vector<128xf32>
    %201 = vector.shape_cast %200 : vector<128xf32> to vector<1x1x128xf32>
    %202 = vector.broadcast %201 : vector<1x1x128xf32> to vector<4x16x128xf32>
    %203 = arith.mulf %198, %202 : vector<4x16x128xf32>
    %204 = arith.addf %197, %203 : vector<4x16x128xf32>
    %205 = vector.shape_cast %5 : vector<128xf32> to vector<1x1x128xf32>
    %206 = vector.broadcast %205 : vector<1x1x128xf32> to vector<4x16x128xf32>
    %207 = arith.addf %204, %206 : vector<4x16x128xf32>
    %cst_92 = arith.constant 0.000000e+00 : f32
    %208 = vector.broadcast %cst_92 : f32 to vector<4x16x128xf32>
    %209 = arith.maximumf %207, %208 : vector<4x16x128xf32>
    %c1_i32_93 = arith.constant 1 : i32
    %210 = arith.addi %0, %c1_i32_93 : i32
    %c0_94 = arith.constant 0 : index
    %211 = arith.index_cast %210 : i32 to index
    %c1_95 = arith.constant 1 : index
    %c0_96 = arith.constant 0 : index
    %212 = vector.load %arg2[%c0_94, %211, %c1_95, %c0_96] : memref<1x18x18x128xf32, #tpu.memory_space<vmem>>, vector<1x4x16x128xf32>
    %213 = vector.shape_cast %212 : vector<1x4x16x128xf32> to vector<4x16x128xf32>
    %214 = vector.extract_strided_slice %209 {offsets = [0, 0, 0], sizes = [1, 16, 128], strides = [1, 1, 1]} : vector<4x16x128xf32> to vector<1x16x128xf32>
    %215 = vector.shape_cast %214 : vector<1x16x128xf32> to vector<16x128xf32>
    %cst_97 = arith.constant dense<0.000000e+00> : vector<16x128xf32>
    %216 = tpu.matmul %215, %6, %cst_97 {dimension_numbers = #tpu.dot_dimension_numbers<[1], [0], [0], [1], [0, 0, 1, 1], [], []>} : vector<16x128xf32>, vector<128x128xf32>, vector<16x128xf32> -> vector<16x128xf32>
    %217 = vector.broadcast %7 : vector<1x128xf32> to vector<16x128xf32>
    %218 = arith.addf %216, %217 : vector<16x128xf32>
    %219 = vector.extract_strided_slice %213 {offsets = [0, 0, 0], sizes = [1, 16, 128], strides = [1, 1, 1]} : vector<4x16x128xf32> to vector<1x16x128xf32>
    %220 = vector.shape_cast %219 : vector<1x16x128xf32> to vector<16x128xf32>
    %221 = arith.addf %218, %220 : vector<16x128xf32>
    %c0_98 = arith.constant 0 : index
    %c0_99 = arith.constant 0 : index
    %c0_100 = arith.constant 0 : index
    %c0_101 = arith.constant 0 : index
    %222 = vector.load %arg9[%c0_98, %c0_99, %c0_100, %c0_101] : memref<1x4x16x128xf32, #tpu.memory_space<vmem>>, vector<1x1x16x128xf32>
    %223 = vector.shape_cast %222 : vector<1x1x16x128xf32> to vector<16x128xf32>
    %224 = vector.shape_cast %221 : vector<16x128xf32> to vector<1x1x16x128xf32>
    tpu.vector_store %arg9[%c0_98, %c0_99, %c0_100, %c0_101], %224 {strides = array<i32>} : memref<1x4x16x128xf32, #tpu.memory_space<vmem>>, vector<1x1x16x128xf32>,
    %225 = vector.extract_strided_slice %209 {offsets = [1, 0, 0], sizes = [1, 16, 128], strides = [1, 1, 1]} : vector<4x16x128xf32> to vector<1x16x128xf32>
    %226 = vector.shape_cast %225 : vector<1x16x128xf32> to vector<16x128xf32>
    %cst_102 = arith.constant dense<0.000000e+00> : vector<16x128xf32>
    %227 = tpu.matmul %226, %6, %cst_102 {dimension_numbers = #tpu.dot_dimension_numbers<[1], [0], [0], [1], [0, 0, 1, 1], [], []>} : vector<16x128xf32>, vector<128x128xf32>, vector<16x128xf32> -> vector<16x128xf32>
    %228 = vector.broadcast %7 : vector<1x128xf32> to vector<16x128xf32>
    %229 = arith.addf %227, %228 : vector<16x128xf32>
    %230 = vector.extract_strided_slice %213 {offsets = [1, 0, 0], sizes = [1, 16, 128], strides = [1, 1, 1]} : vector<4x16x128xf32> to vector<1x16x128xf32>
    %231 = vector.shape_cast %230 : vector<1x16x128xf32> to vector<16x128xf32>
    %232 = arith.addf %229, %231 : vector<16x128xf32>
    %c0_103 = arith.constant 0 : index
    %c1_104 = arith.constant 1 : index
    %c0_105 = arith.constant 0 : index
    %c0_106 = arith.constant 0 : index
    %233 = vector.load %arg9[%c0_103, %c1_104, %c0_105, %c0_106] : memref<1x4x16x128xf32, #tpu.memory_space<vmem>>, vector<1x1x16x128xf32>
    %234 = vector.shape_cast %233 : vector<1x1x16x128xf32> to vector<16x128xf32>
    %235 = vector.shape_cast %232 : vector<16x128xf32> to vector<1x1x16x128xf32>
    tpu.vector_store %arg9[%c0_103, %c1_104, %c0_105, %c0_106], %235 {strides = array<i32>} : memref<1x4x16x128xf32, #tpu.memory_space<vmem>>, vector<1x1x16x128xf32>,
    %236 = vector.extract_strided_slice %209 {offsets = [2, 0, 0], sizes = [1, 16, 128], strides = [1, 1, 1]} : vector<4x16x128xf32> to vector<1x16x128xf32>
    %237 = vector.shape_cast %236 : vector<1x16x128xf32> to vector<16x128xf32>
    %cst_107 = arith.constant dense<0.000000e+00> : vector<16x128xf32>
    %238 = tpu.matmul %237, %6, %cst_107 {dimension_numbers = #tpu.dot_dimension_numbers<[1], [0], [0], [1], [0, 0, 1, 1], [], []>} : vector<16x128xf32>, vector<128x128xf32>, vector<16x128xf32> -> vector<16x128xf32>
    %239 = vector.broadcast %7 : vector<1x128xf32> to vector<16x128xf32>
    %240 = arith.addf %238, %239 : vector<16x128xf32>
    %241 = vector.extract_strided_slice %213 {offsets = [2, 0, 0], sizes = [1, 16, 128], strides = [1, 1, 1]} : vector<4x16x128xf32> to vector<1x16x128xf32>
    %242 = vector.shape_cast %241 : vector<1x16x128xf32> to vector<16x128xf32>
    %243 = arith.addf %240, %242 : vector<16x128xf32>
    %c0_108 = arith.constant 0 : index
    %c2_109 = arith.constant 2 : index
    %c0_110 = arith.constant 0 : index
    %c0_111 = arith.constant 0 : index
    %244 = vector.load %arg9[%c0_108, %c2_109, %c0_110, %c0_111] : memref<1x4x16x128xf32, #tpu.memory_space<vmem>>, vector<1x1x16x128xf32>
    %245 = vector.shape_cast %244 : vector<1x1x16x128xf32> to vector<16x128xf32>
    %246 = vector.shape_cast %243 : vector<16x128xf32> to vector<1x1x16x128xf32>
    tpu.vector_store %arg9[%c0_108, %c2_109, %c0_110, %c0_111], %246 {strides = array<i32>} : memref<1x4x16x128xf32, #tpu.memory_space<vmem>>, vector<1x1x16x128xf32>,
    %247 = vector.extract_strided_slice %209 {offsets = [3, 0, 0], sizes = [1, 16, 128], strides = [1, 1, 1]} : vector<4x16x128xf32> to vector<1x16x128xf32>
    %248 = vector.shape_cast %247 : vector<1x16x128xf32> to vector<16x128xf32>
    %cst_112 = arith.constant dense<0.000000e+00> : vector<16x128xf32>
    %249 = tpu.matmul %248, %6, %cst_112 {dimension_numbers = #tpu.dot_dimension_numbers<[1], [0], [0], [1], [0, 0, 1, 1], [], []>} : vector<16x128xf32>, vector<128x128xf32>, vector<16x128xf32> -> vector<16x128xf32>
    %250 = vector.broadcast %7 : vector<1x128xf32> to vector<16x128xf32>
    %251 = arith.addf %249, %250 : vector<16x128xf32>
    %252 = vector.extract_strided_slice %213 {offsets = [3, 0, 0], sizes = [1, 16, 128], strides = [1, 1, 1]} : vector<4x16x128xf32> to vector<1x16x128xf32>
    %253 = vector.shape_cast %252 : vector<1x16x128xf32> to vector<16x128xf32>
    %254 = arith.addf %251, %253 : vector<16x128xf32>
    %c0_113 = arith.constant 0 : index
    %c3_114 = arith.constant 3 : index
    %c0_115 = arith.constant 0 : index
    %c0_116 = arith.constant 0 : index
    %255 = vector.load %arg9[%c0_113, %c3_114, %c0_115, %c0_116] : memref<1x4x16x128xf32, #tpu.memory_space<vmem>>, vector<1x1x16x128xf32>
    %256 = vector.shape_cast %255 : vector<1x1x16x128xf32> to vector<16x128xf32>
    %257 = vector.shape_cast %254 : vector<16x128xf32> to vector<1x1x16x128xf32>
    tpu.vector_store %arg9[%c0_113, %c3_114, %c0_115, %c0_116], %257 {strides = array<i32>} : memref<1x4x16x128xf32, #tpu.memory_space<vmem>>, vector<1x1x16x128xf32>,
    return
  }
  func.func @transform_0(%arg0: i32, %arg1: i32) -> (i32, i32, i32, i32) {
    %c0_i32 = arith.constant 0 : i32
    %c0_i32_0 = arith.constant 0 : i32
    %c0_i32_1 = arith.constant 0 : i32
    %c0_i32_2 = arith.constant 0 : i32
    return %arg0, %c0_i32, %c0_i32_0, %c0_i32_1 : i32, i32, i32, i32
  }
  func.func @transform_1(%arg0: i32, %arg1: i32) -> (i32, i32) {
    %c0_i32 = arith.constant 0 : i32
    %c0_i32_0 = arith.constant 0 : i32
    %c0_i32_1 = arith.constant 0 : i32
    return %c0_i32, %c0_i32_0 : i32, i32
  }
  func.func @transform_2(%arg0: i32, %arg1: i32) -> (i32, i32) {
    %c0_i32 = arith.constant 0 : i32
    %c0_i32_0 = arith.constant 0 : i32
    %c0_i32_1 = arith.constant 0 : i32
    return %c0_i32, %c0_i32_0 : i32, i32
  }
  func.func @transform_3(%arg0: i32, %arg1: i32) -> (i32, i32, i32) {
    %c0_i32 = arith.constant 0 : i32
    %c0_i32_0 = arith.constant 0 : i32
    %c0_i32_1 = arith.constant 0 : i32
    %c0_i32_2 = arith.constant 0 : i32
    return %c0_i32, %c0_i32_0, %c0_i32_1 : i32, i32, i32
  }
  func.func @transform_4(%arg0: i32, %arg1: i32) -> (i32, i32) {
    %c0_i32 = arith.constant 0 : i32
    %c0_i32_0 = arith.constant 0 : i32
    %c0_i32_1 = arith.constant 0 : i32
    return %c0_i32, %c0_i32_0 : i32, i32
  }
  func.func @transform_5(%arg0: i32, %arg1: i32) -> (i32, i32) {
    %c0_i32 = arith.constant 0 : i32
    %c0_i32_0 = arith.constant 0 : i32
    %c0_i32_1 = arith.constant 0 : i32
    return %c0_i32, %c0_i32_0 : i32, i32
  }
  func.func @transform_6(%arg0: i32, %arg1: i32) -> (i32, i32) {
    %c0_i32 = arith.constant 0 : i32
    %c0_i32_0 = arith.constant 0 : i32
    %c0_i32_1 = arith.constant 0 : i32
    return %c0_i32, %c0_i32_0 : i32, i32
  }
  func.func @transform_7(%arg0: i32, %arg1: i32) -> (i32, i32, i32, i32) {
    %c0_i32 = arith.constant 0 : i32
    %c0_i32_0 = arith.constant 0 : i32
    %c0_i32_1 = arith.constant 0 : i32
    return %arg0, %arg1, %c0_i32, %c0_i32_0 : i32, i32, i32, i32
  }
}

</mosaic_0001>

<bundles_post_ra>
// kernel: tpu_custom_call.1
= control target key start
LH: loop header
LB: loop body
LE: loop exit
PB: predicated region body
PF: predicated region fallthrough
CT: control target
= control target key end

     0   :  { %12 = vsyncpa [#allocation4], 0  ;;  %s3680_s0 = inlined_call_operand.vmem [shape: f32[2,18,18,128], index: 0, kind: input, shape index: {}]   ;;  %s3681_s1 = inlined_call_operand.vmem [shape: f32[128,128], index: 1, kind: input, shape index: {}]   ;;  %s3682_s2 = inlined_call_operand.vmem [shape: f32[1,128], index: 2, kind: input, shape index: {}]   ;;  %s3683_s3 = inlined_call_operand.vmem [shape: f32[3,3,128], index: 3, kind: input, shape index: {}]   ;;  %s3684_s4 = inlined_call_operand.vmem [shape: f32[1,128], index: 4, kind: input, shape index: {}]   ;;  %s3685_s5 = inlined_call_operand.vmem [shape: f32[128,128], index: 5, kind: input, shape index: {}]   ;;  %s3686_s6 = inlined_call_operand.vmem [shape: f32[1,128], index: 6, kind: input, shape index: {}]   ;;  %s3687_s7 = inlined_call_operand.hbm [shape: f32[2,16,16,128], index: 7, kind: output, shape index: {}]  }
   0x1   :  { %14 = vsyncpa [#allocation4 + $0x1], 0  ;;  %s2815_s24 = smov 0   ;;  %s2817_s25 = smov 0  }
   0x2   :  { %s2819_s26 = smov 0   ;;  %s2821_s27 = smov 0  }
   0x3   :  { %s2823_s28 = smov 0   ;;  %s2825_s29 = smov 0  }
   0x4   :  { %s2827_s30 = smov 0   ;;  %s2829_s8 = smov 0  }
   0x5 LB: > { %s1710_s9 = sadd.s32 4294967295, %s2767_s8   ;;  %s1711_s10 = sadd.s32 4294967294, %s2767_s8   ;;  %s2767_s8 = sphi %s2829_s8, %s20_s8   ;;  %s2763_s30 = sphi %s2827_s30, %s3720_s30   ;;  %s2759_s29 = sphi %s2825_s29, %s3719_s29   ;;  %s2755_s28 = sphi %s2823_s28, %s3718_s28   ;;  %s2751_s27 = sphi %s2821_s27, %s3717_s27   ;;  %s2747_s26 = sphi %s2819_s26, %s3716_s26   ;;  %s2743_s25 = sphi %s2817_s25, %s3715_s25   ;;  %s2739_s24 = sphi %s2815_s24, %s3714_s24  }
   0x6   : > { %s29_s11 = sadd.s32 1, %s2759_s29  ;;  %s32_s12 = sadd.s32 1, %s2763_s30 }
   0x7   : > { %p30_p0 = scmp.ge.s32.totalorder %s29_s11, 4  ;;  %p203_p1 = scmp.ne.s32.totalorder %s2747_s26, %s2743_s25 }
   0x8   : > { %p204_p2 = scmp.eq.s32.totalorder %s1710_s9, 7  ;;  %p209_p5 = scmp.ne.s32.totalorder %s2743_s25, %s2739_s24 }
   0x9   : > { %s3722_s11 = smov (%p30_p0, %s29_s11), 0  ;;  %s3724_s12 = smov (!%p30_p0, %s32_s12), %s2763_s30 }
   0xa   : > { %s189_s13 = ssub.s32 %s2759_s29, %s3722_s11  ;;  %p2866_p3 = por %p204_p2, %p203_p1 }
   0xb   : > { %p34_p4 = scmp.ge.s32.totalorder %s3724_s12, 2  ;;  %p210_p6 = scmp.eq.s32.totalorder %s1711_s10, 7 }
   0xc   : > { %p1714_p7 = scmp.ge.s32.totalorder %s2767_s8, 1  ;;  %p254_p9 = scmp.lt.s32.totalorder %s2767_s8, 9 }
   0xd   : > { %s3726_s12 = smov (%p34_p4, %s3724_s12), 0  ;;  %p2875_p8 = por %p210_p6, %p209_p5 }
   0xe   : > { %s188_s16 = ssub.s32 %s2763_s30, %s3726_s12  ;;  %s193_s17 = sadd.s32 1, %s2747_s26 }
   0xf   : > { %s190_s18 = sor.u32 %s189_s13, %s188_s16  ;;  %p255_p10 = pnand %p1714_p7, %p254_p9 }
  0x10   : > { %p191_p11 = scmp.eq.s32.totalorder %s190_s18, 0  ;;  %v293_v0 = vld [vmem:[%s3681_s1] sm:$0xff] (!%p255_p10)  ;;  %v294_v1 = vld [vmem:[%s3681_s1 + $0x8] sm:$0xff] (!%p255_p10)  ;;  %v295_v2 = vld [vmem:[%s3681_s1 + $0x10] sm:$0xff] (!%p255_p10)  ;;  %v2769_v3 = vmov (!%p255_p10), 0.0|0.0   ;;  %vm2770_vm0 = vmmov (!%p255_p10), 0  }
  0x11   : > { %258 = sbr.rel (%p255_p10) target bundleno = 597 (0x255), region = 48  ;;  %2324 = vmatprep.subr.bf16.mxu0 (!%p255_p10), %v2769_v3  ;;  %v2896_v4 = vpack.c.bf16 (!%p255_p10), %v294_v1, %v293_v0  ;;  %2348 = vmatprep.subr.bf16.mxu1 (!%p255_p10), %v2769_v3  ;;  %v296_v5 = vld [vmem:[%s3681_s1 + $0x18] sm:$0xff] (!%p255_p10)  ;;  %v2771_v6 = vmov (!%p255_p10), 0.0   ;;  %v297_v8 = vld [vmem:[%s3681_s1 + $0x20] sm:$0xff] (!%p255_p10)  ;;  %v298_v9 = vld [vmem:[%s3681_s1 + $0x28] sm:$0xff] (!%p255_p10)  ;;  %p286_p12 = scmp.lt.s32.totalorder (!%p255_p10), %s2755_s28, 1 }
  0x12   : > { %s2884_s19 = scalar_select %p191_p11, %s2747_s26, %s193_s17  }
  0x13   : > { %1970 = vmatprep.mubr.msk.f32.mxu0 (!%p255_p10), %vm2770_vm0, %v2771_v6  ;;  %2011 = vmatprep.mubr.msk.f32.mxu1 (!%p255_p10), %vm2770_vm0, %v2771_v6  ;;  %v2908_v7 = vpack.c.bf16 (!%p255_p10), %v296_v5, %v295_v2  ;;  %v2920_v10 = vpack.c.bf16 (!%p255_p10), %v298_v9, %v297_v8  ;;  %v299_v11 = vld [vmem:[%s3681_s1 + $0x30] sm:$0xff] (!%p255_p10)  ;;  %v300_v12 = vld [vmem:[%s3681_s1 + $0x38] sm:$0xff] (!%p255_p10)  ;;  %v301_v14 = vld [vmem:[%s3681_s1 + $0x40] sm:$0xff] (!%p255_p10)  ;;  %s1718_s10 = smul.u32 (!%p255_p10), 96, %s2751_s27  ;;  %s283_s20 = sand.u32 (!%p255_p10), 1, %s2743_s25  }
  0x14   : > { %2326 = vmatpush3.bf16.msra.mxu0 (!%p255_p10), %v2896_v4  ;;  %2350 = vmatpush3.bf16.msra.mxu1 (!%p255_p10), %v2896_v4  ;;  %v2932_v13 = vpack.c.bf16 (!%p255_p10), %v300_v12, %v299_v11  ;;  %v302_v15 = vld [vmem:[%s3681_s1 + $0x48] sm:$0xff] (!%p255_p10)  ;;  %v303_v17 = vld [vmem:[%s3681_s1 + $0x50] sm:$0xff] (!%p255_p10)  ;;  %v304_v18 = vld [vmem:[%s3681_s1 + $0x58] sm:$0xff] (!%p255_p10) }
  0x15   : > { %2327 = vmatprep.subr.bf16.mxu0 (!%p255_p10), %v2769_v3  ;;  %2351 = vmatprep.subr.bf16.mxu1 (!%p255_p10), %v2769_v3  ;;  %v2945_v16 = vpack.c.bf16 (!%p255_p10), %v302_v15, %v301_v14  ;;  %v2958_v19 = vpack.c.bf16 (!%p255_p10), %v304_v18, %v303_v17  ;;  %v305_v20 = vld [vmem:[%s3681_s1 + $0x60] sm:$0xff] (!%p255_p10)  ;;  %v306_v21 = vld [vmem:[%s3681_s1 + $0x68] sm:$0xff] (!%p255_p10)  ;;  %v307_v23 = vld [vmem:[%s3681_s1 + $0x70] sm:$0xff] (!%p255_p10) }
  0x16   : > { %v2970_v22 = vpack.c.bf16 (!%p255_p10), %v306_v21, %v305_v20  ;;  %v308_v24 = vld [vmem:[%s3681_s1 + $0x78] sm:$0xff] (!%p255_p10)  ;;  %v314_v44 = vld [vmem:[%s3685_s5] sm:$0xff] (!%p255_p10)  ;;  %v315_v45 = vld [vmem:[%s3685_s5 + $0x8] sm:$0xff] (!%p255_p10) }
  0x17   : > { %v2986_v25 = vpack.c.bf16 (!%p255_p10), %v308_v24, %v307_v23  ;;  %v3114_v46 = vpack.c.bf16 (!%p255_p10), %v315_v45, %v314_v44  ;;  %v316_v47 = vld [vmem:[%s3685_s5 + $0x10] sm:$0xff] (!%p255_p10)  ;;  %v317_v48 = vld [vmem:[%s3685_s5 + $0x18] sm:$0xff] (!%p255_p10)  ;;  %v318_v50 = vld [vmem:[%s3685_s5 + $0x20] sm:$0xff] (!%p255_p10) }
  0x18   : > { %2329 = vmatpush3.bf16.msra.mxu0 %v2908_v7  ;;  %2353 = vmatpush3.bf16.msra.mxu1 %v2908_v7  ;;  %s287_s9 = scalar_select %p286_p12, %s2755_s28, 1  ;;  %v3126_v49 = vpack.c.bf16 %v317_v48, %v316_v47  ;;  %v319_v51 = vld [vmem:[%s3685_s5 + $0x28] sm:$0xff]  ;;  %v320_v53 = vld [vmem:[%s3685_s5 + $0x30] sm:$0xff]  ;;  %v321_v54 = vld [vmem:[%s3685_s5 + $0x38] sm:$0xff] }
  0x19   : > { %2330 = vmatprep.subr.bf16.mxu0 %v2769_v3  ;;  %2354 = vmatprep.subr.bf16.mxu1 %v2769_v3  ;;  %v3138_v52 = vpack.c.bf16 %v319_v51, %v318_v50  ;;  %v3150_v55 = vpack.c.bf16 %v321_v54, %v320_v53  ;;  %v322_v56 = vld [vmem:[%s3685_s5 + $0x40] sm:$0xff]  ;;  %v323_v57 = vld [vmem:[%s3685_s5 + $0x48] sm:$0xff]  ;;  %v324_v59 = vld [vmem:[%s3685_s5 + $0x50] sm:$0xff] }
  0x1a   : > { %s2596_s18 = smul.u32 432, %s287_s9  ;;  %v3162_v58 = vpack.c.bf16 %v323_v57, %v322_v56  ;;  %v325_v60 = vld [vmem:[%s3685_s5 + $0x58] sm:$0xff]  ;;  %v326_v62 = vld [vmem:[%s3685_s5 + $0x60] sm:$0xff]  ;;  %v327_v63 = vld [vmem:[%s3685_s5 + $0x68] sm:$0xff] }
  0x1b   : > { %v3170_v61 = vpack.c.bf16 %v325_v60, %v324_v59  ;;  %v3183_v0 = vpack.c.bf16 %v327_v63, %v326_v62  ;;  %v328_v1 = vld [vmem:[%s3685_s5 + $0x70] sm:$0xff]  ;;  %v329_v2 = vld [vmem:[%s3685_s5 + $0x78] sm:$0xff]  ;;  %v3217_v8 = vld [vmem:[%s3682_s2] ss:$0 sm:$0xff] }
  0x1c   : > { %2332 = vmatpush3.bf16.msra.mxu0 %v2920_v10  ;;  %2356 = vmatpush3.bf16.msra.mxu1 %v2920_v10  ;;  %s290_s16 = scalar_lea.vmem %s3680_s0, %s2596_s18  ;;  %v311_v48 = vld [vmem:[%s3683_s3 + $0x4] sm:$0x7] }
  0x1d   : > { %2333 = vmatprep.subr.bf16.mxu0 %v2769_v3  ;;  %2357 = vmatprep.subr.bf16.mxu1 %v2769_v3  ;;  %s2990_s17 = scalar_lea.vmem %s290_s16, %s1718_s10  ;;  %s3207_s10 = sshll.u32 %s2751_s27, 2 }
  0x1e   : > { %v333_v26 = vld [vmem:[%s2990_s17] sm:$0xff]  ;;  %v336_v27 = vld [vmem:[%s2990_s17 + $0x18] sm:$0xff]  ;;  %v334_v28 = vld [vmem:[%s2990_s17 + $0x8] sm:$0xff]  ;;  %s558_s9 = sadd.s32 1, %s3207_s10  ;;  %p453_p13 = scmp.ge.s32.totalorder %s3207_s10, 1 }
  0x1f   : > { %v337_v29 = vld [vmem:[%s2990_s17 + $0x20] sm:$0xff]  ;;  %v335_v30 = vld [vmem:[%s2990_s17 + $0x10] sm:$0x3]  ;;  %v338_v31 = vld [vmem:[%s2990_s17 + $0x28] sm:$0x3]  ;;  %p454_p0 = scmp.lt.s32.totalorder %s3207_s10, 17 }
  0x20   : > { %2335 = vmatpush3.bf16.msra.mxu0 %v2932_v13  ;;  %2359 = vmatpush3.bf16.msra.mxu1 %v2932_v13  ;;  %v339_v32 = vld [vmem:[%s2990_s17 + $0x30] sm:$0xff]  ;;  %v342_v33 = vld [vmem:[%s2990_s17 + $0x48] sm:$0xff]  ;;  %v340_v34 = vld [vmem:[%s2990_s17 + $0x38] sm:$0xff]  ;;  %p559_p1 = scmp.ge.s32.totalorder %s558_s9, 1  ;;  %p560_p2 = scmp.lt.s32.totalorder %s558_s9, 17 }
  0x21   : > { %2336 = vmatprep.subr.bf16.mxu0 %v2769_v3  ;;  %2360 = vmatprep.subr.bf16.mxu1 %v2769_v3  ;;  %v343_v35 = vld [vmem:[%s2990_s17 + $0x50] sm:$0xff]  ;;  %v341_v36 = vld [vmem:[%s2990_s17 + $0x40] sm:$0x3]  ;;  %v344_v37 = vld [vmem:[%s2990_s17 + $0x58] sm:$0x3]  ;;  %p455_p4 = pnand %p454_p0, %p453_p13  ;;  %s665_s23 = sadd.s32 2, %s3207_s10 }
  0x22   : > { %v345_v38 = vld [vmem:[%s2990_s17 + $0x60] sm:$0xff]  ;;  %v348_v39 = vld [vmem:[%s2990_s17 + $0x78] sm:$0xff]  ;;  %v346_v40 = vld [vmem:[%s2990_s17 + $0x68] sm:$0xff]  ;;  %p561_p5 = pnand %p560_p2, %p559_p1  ;;  %s772_s9 = sadd.s32 3, %s3207_s10 }
  0x23   : > { %v349_v41 = vld [vmem:[%s2990_s17 + $0x80] sm:$0xff]  ;;  %v347_v42 = vld [vmem:[%s2990_s17 + $0x70] sm:$0x3]  ;;  %v350_v43 = vld [vmem:[%s2990_s17 + $0x88] sm:$0x3]  ;;  %p3280_p6 = scmp.ge.s32.totalorder %s665_s23, 1 }
  0x24   : > { %2338 = vmatpush3.bf16.msra.mxu0 %v2945_v16  ;;  %2362 = vmatpush3.bf16.msra.mxu1 %v2945_v16  ;;  %s1720_s13 = scalar_select %p455_p4, 0, 1 }
  0x25   : > { %2339 = vmatprep.subr.bf16.mxu0 %v2769_v3  ;;  %2363 = vmatprep.subr.bf16.mxu1 %v2769_v3  ;;  %s1721_s16 = scalar_select %p561_p5, 0, 1 }
  0x26   : > { %p3284_p7 = scmp.lt.s32.totalorder %s665_s23, 17  ;;  %p3291_p9 = scmp.ge.s32.totalorder %s772_s9, 1 }
  0x27   : > { %p3295_p10 = scmp.lt.s32.totalorder %s772_s9, 17  ;;  %s879_s18 = sadd.s32 4, %s3207_s10 }
  0x28   : > { %2341 = vmatpush3.bf16.msra.mxu0 %v2958_v19  ;;  %2365 = vmatpush3.bf16.msra.mxu1 %v2958_v19  ;;  %p668_p11 = pnand %p3284_p7, %p3280_p6  ;;  %p3379_p13 = scmp.ge.s32.totalorder %s879_s18, 1 }
  0x29   : > { %2342 = vmatprep.subr.bf16.mxu0 %v2769_v3  ;;  %2366 = vmatprep.subr.bf16.mxu1 %v2769_v3  ;;  %p775_p12 = pnand %p3295_p10, %p3291_p9  ;;  %p3383_p0 = scmp.lt.s32.totalorder %s879_s18, 17 }
  0x2a   : > { %s1722_s23 = scalar_select %p668_p11, 0, 1 }
  0x2b   : > { %s1723_s9 = scalar_select %p775_p12, 0, 1 }
  0x2c   : > { %2344 = vmatpush3.bf16.msra.mxu0 %v2970_v22  ;;  %2368 = vmatpush3.bf16.msra.mxu1 %v2970_v22  ;;  %p882_p1 = pnand %p3383_p0, %p3379_p13  ;;  %s986_s22 = sadd.s32 5, %s3207_s10 }
  0x2d   : > { %2345 = vmatprep.subr.bf16.mxu0 %v2769_v3  ;;  %2369 = vmatprep.subr.bf16.mxu1 %v2769_v3  ;;  %p3419_p2 = scmp.ge.s32.totalorder %s986_s22, 1  ;;  %p3423_p4 = scmp.lt.s32.totalorder %s986_s22, 17 }
  0x2e   : > { %s1747_s10 = sshll.u32 %s2755_s28, 5 }
  0x2f   : > { %p989_p5 = pnand %p3423_p4, %p3419_p2 }
  0x30   : > { %2347 = vmatpush3.bf16.msra.mxu0 %v2986_v25  ;;  %2371 = vmatpush3.bf16.msra.mxu1 %v2986_v25 }
  0x31   : > { %2372 = vmatprep.subr.bf16.mxu0 %v2769_v3  ;;  %2396 = vmatprep.subr.bf16.mxu1 %v2769_v3  ;;  %s3464_s18 = scalar_select %p989_p5, 0, 1 }
  0x33   : > { %1971 = vmatmul.mubr.f32.vlgmr.msra.gmra.mrb[0].mxu0 %v333_v26  ;;  %2012 = vmatmul.mubr.f32.vlgmr.msra.gmra.mrb[0].mxu1 %v336_v27 }
  0x34   : > { %2374 = vmatpush3.bf16.msra.mxu0 %v2896_v4  ;;  %2398 = vmatpush3.bf16.msra.mxu1 %v2896_v4 }
  0x35   : > { %1973 = vmatprep.mubr.msk.f32.mxu0 %vm2770_vm0, %v2771_v6  ;;  %2014 = vmatprep.mubr.msk.f32.mxu1 %vm2770_vm0, %v2771_v6 }
  0x36   : > { %2375 = vmatprep.subr.bf16.mxu0 %v2769_v3  ;;  %2399 = vmatprep.subr.bf16.mxu1 %v2769_v3 }
  0x37   : > { %1974 = vmatmul.mubr.f32.gmra.mrb[2].mxu0 %v334_v28  ;;  %2015 = vmatmul.mubr.f32.gmra.mrb[2].mxu1 %v337_v29 }
  0x38   : > { %2377 = vmatpush3.bf16.msra.mxu0 %v2908_v7  ;;  %2401 = vmatpush3.bf16.msra.mxu1 %v2908_v7 }
  0x39   : > { %2378 = vmatprep.subr.bf16.mxu0 %v2769_v3  ;;  %2402 = vmatprep.subr.bf16.mxu1 %v2769_v3 }
  0x3a   : > { %1976 = vmatprep.mubr.msk.f32.mxu0 %vm2770_vm0, %v2771_v6  ;;  %2017 = vmatprep.mubr.msk.f32.mxu1 %vm2770_vm0, %v2771_v6 }
  0x3b   : > { %1977 = vmatmul.mubr.f32.gmra.mrb[4].mxu0 %v335_v30  ;;  %2018 = vmatmul.mubr.f32.gmra.mrb[4].mxu1 %v338_v31 }
  0x3c   : > { %2380 = vmatpush3.bf16.msra.mxu0 %v2920_v10  ;;  %2404 = vmatpush3.bf16.msra.mxu1 %v2920_v10 }
  0x3d   : > { %2381 = vmatprep.subr.bf16.mxu0 %v2769_v3  ;;  %2405 = vmatprep.subr.bf16.mxu1 %v2769_v3 }
  0x3e   : > { %2052 = vmatprep.mubr.msk.f32.mxu0 %vm2770_vm0, %v2771_v6  ;;  %2093 = vmatprep.mubr.msk.f32.mxu1 %vm2770_vm0, %v2771_v6 }
  0x40   : > { %2383 = vmatpush3.bf16.msra.mxu0 %v2932_v13  ;;  %2407 = vmatpush3.bf16.msra.mxu1 %v2932_v13 }
  0x41   : > { %2384 = vmatprep.subr.bf16.mxu0 %v2769_v3  ;;  %2408 = vmatprep.subr.bf16.mxu1 %v2769_v3 }
  0x44   : > { %2386 = vmatpush3.bf16.msra.mxu0 %v2945_v16  ;;  %2410 = vmatpush3.bf16.msra.mxu1 %v2945_v16 }
  0x45   : > { %2387 = vmatprep.subr.bf16.mxu0 %v2769_v3  ;;  %2411 = vmatprep.subr.bf16.mxu1 %v2769_v3 }
  0x48   : > { %2389 = vmatpush3.bf16.msra.mxu0 %v2958_v19  ;;  %2413 = vmatpush3.bf16.msra.mxu1 %v2958_v19 }
  0x49   : > { %2390 = vmatprep.subr.bf16.mxu0 %v2769_v3  ;;  %2414 = vmatprep.subr.bf16.mxu1 %v2769_v3 }
  0x4c   : > { %2392 = vmatpush3.bf16.msra.mxu0 %v2970_v22  ;;  %2416 = vmatpush3.bf16.msra.mxu1 %v2970_v22 }
  0x4d   : > { %2393 = vmatprep.subr.bf16.mxu0 %v2769_v3  ;;  %2417 = vmatprep.subr.bf16.mxu1 %v2769_v3 }
  0x50   : > { %2395 = vmatpush3.bf16.msra.mxu0 %v2986_v25  ;;  %2419 = vmatpush3.bf16.msra.mxu1 %v2986_v25 }
  0x51   : > { %2420 = vmatprep.subr.bf16.mxu0 %v2769_v3  ;;  %2444 = vmatprep.subr.bf16.mxu1 %v2769_v3 }
  0x53   : > { %2053 = vmatmul.mubr.f32.vlgmr.msra.gmra.mrb[6].mxu0 %v339_v32  ;;  %2094 = vmatmul.mubr.f32.vlgmr.msra.gmra.mrb[6].mxu1 %v342_v33 }
  0x54   : > { %2422 = vmatpush3.bf16.msra.mxu0 %v2896_v4  ;;  %2055 = vmatprep.mubr.msk.f32.mxu0 %vm2770_vm0, %v2771_v6 }
  0x55   : > { %2446 = vmatpush3.bf16.msra.mxu1 %v2896_v4  ;;  %2096 = vmatprep.mubr.msk.f32.mxu1 %vm2770_vm0, %v2771_v6  ;;  %v351_v4 = vlaneseq }
  0x56   : > { %2423 = vmatprep.subr.bf16.mxu0 %v2769_v3  ;;  %2447 = vmatprep.subr.bf16.mxu1 %v2769_v3 }
  0x57   : > { %2056 = vmatmul.mubr.f32.gmra.mrb[8].mxu0 %v340_v34  ;;  %2097 = vmatmul.mubr.f32.gmra.mrb[8].mxu1 %v343_v35  ;;  %v3212_v5 = vshrl.u32 %v351_v4, 7 }
  0x58   : > { %2425 = vmatpush3.bf16.msra.mxu0 %v2908_v7  ;;  %2058 = vmatprep.mubr.msk.f32.mxu0 %vm2770_vm0, %v2771_v6 }
  0x59   : > { %2449 = vmatpush3.bf16.msra.mxu1 %v2908_v7  ;;  %2099 = vmatprep.mubr.msk.f32.mxu1 %vm2770_vm0, %v2771_v6  ;;  %v564_v7 = vstv %s1721_s16  ;;  %vm355_vm1 = vcmp.ge.s32.totalorder %v3212_v5, 1 }
  0x5a   : > { %2426 = vmatprep.subr.bf16.mxu0 %v2769_v3  ;;  %2450 = vmatprep.subr.bf16.mxu1 %v2769_v3  ;;  %vm3220_vm3 = vcmp.eq.s32.totalorder %v564_v7, 1 }
  0x5b   : > { %2059 = vmatmul.mubr.f32.gmra.mrb[10].mxu0 %v341_v36  ;;  %2100 = vmatmul.mubr.f32.gmra.mrb[10].mxu1 %v344_v37  ;;  %vm566_vm5 = vmand %vm355_vm1, %vm3220_vm3  ;;  %v3253_v37 = vsub.s32 0, %v3212_v5 }
  0x5c   : > { %2428 = vmatpush3.bf16.msra.mxu0 %v2920_v10  ;;  %2134 = vmatprep.mubr.msk.f32.mxu0 %vm2770_vm0, %v2771_v6 }
  0x5d   : > { %2452 = vmatpush3.bf16.msra.mxu1 %v2920_v10  ;;  %2429 = vmatprep.subr.bf16.mxu0 %v2769_v3  ;;  %v3300_v54 = vrot.slane %v311_v48, %v3253_v37 }
  0x5e   : > { %2453 = vmatprep.subr.bf16.mxu1 %v2769_v3  ;;  %2175 = vmatprep.mubr.msk.f32.mxu1 %vm2770_vm0, %v2771_v6 }
  0x60   : > { %2431 = vmatpush3.bf16.msra.mxu0 %v2932_v13 }
  0x61   : > { %2455 = vmatpush3.bf16.msra.mxu1 %v2932_v13  ;;  %2432 = vmatprep.subr.bf16.mxu0 %v2769_v3 }
  0x62   : > { %2456 = vmatprep.subr.bf16.mxu1 %v2769_v3 }
  0x64   : > { %2434 = vmatpush3.bf16.msra.mxu0 %v2945_v16 }
  0x65   : > { %2458 = vmatpush3.bf16.msra.mxu1 %v2945_v16  ;;  %2435 = vmatprep.subr.bf16.mxu0 %v2769_v3  ;;  %v3234_v16 = vadd.s32 16, %v3212_v5 }
  0x66   : > { %2459 = vmatprep.subr.bf16.mxu1 %v2769_v3 }
  0x67   : > { %vm360_vm6 = vcmp.lt.s32.totalorder %v3234_v16, 17 }
  0x68   : > { %2437 = vmatpush3.bf16.msra.mxu0 %v2958_v19  ;;  %vm568_vm8 = vmand %vm360_vm6, %vm3220_vm3 }
  0x69   : > { %2461 = vmatpush3.bf16.msra.mxu1 %v2958_v19  ;;  %2438 = vmatprep.subr.bf16.mxu0 %v2769_v3 }
  0x6a   : > { %2462 = vmatprep.subr.bf16.mxu1 %v2769_v3 }
  0x6c   : > { %2440 = vmatpush3.bf16.msra.mxu0 %v2970_v22 }
  0x6d   : > { %2464 = vmatpush3.bf16.msra.mxu1 %v2970_v22  ;;  %2441 = vmatprep.subr.bf16.mxu0 %v2769_v3 }
  0x6e   : > { %2465 = vmatprep.subr.bf16.mxu1 %v2769_v3  ;;  %v3195_v3 = vpack.c.bf16 %v329_v2, %v328_v1 }
  0x70   : > { %2443 = vmatpush3.bf16.msra.mxu0 %v2986_v25 }
  0x71   : > { %2467 = vmatpush3.bf16.msra.mxu1 %v2986_v25  ;;  %2469 = vmatprep.subr.bf16.mxu0 %v3114_v46 }
  0x72   : > { %2501 = vmatprep.subr.bf16.mxu1 %v3114_v46 }
  0x73   : > { %2135 = vmatmul.mubr.f32.vlgmr.msra.gmra.mrb[12].mxu0 %v345_v38  ;;  %v3256_v38 = vsub.s32 1, %v3212_v5 }
  0x74   : > { %2176 = vmatmul.mubr.f32.vlgmr.msra.gmra.mrb[12].mxu1 %v348_v39  ;;  %2137 = vmatprep.mubr.msk.f32.mxu0 %vm2770_vm0, %v2771_v6  ;;  %v310_v39 = vld [vmem:[%s3683_s3] sm:$0x7] }
  0x75   : > { %2178 = vmatprep.mubr.msk.f32.mxu1 %vm2770_vm0, %v2771_v6  ;;  %2471 = vmatpush3.bf16.msra.mxu0 %v3114_v46  ;;  %v3272_v45 = vrot.slane %v310_v39, %v3253_v37  ;;  %v3275_v47 = vrot.slane %v310_v39, %v3256_v38 }
  0x76   : > { %2503 = vmatpush3.bf16.msra.mxu1 %v3114_v46  ;;  %2473 = vmatprep.subr.bf16.mxu0 %v3126_v49 }
  0x77   : > { %2138 = vmatmul.mubr.f32.gmra.mrb[14].mxu0 %v346_v40  ;;  %2505 = vmatprep.subr.bf16.mxu1 %v3126_v49 }
  0x78   : > { %2179 = vmatmul.mubr.f32.gmra.mrb[14].mxu1 %v349_v41  ;;  %2140 = vmatprep.mubr.msk.f32.mxu0 %vm2770_vm0, %v2771_v6 }
  0x79   : > { %2181 = vmatprep.mubr.msk.f32.mxu1 %vm2770_vm0, %v2771_v6  ;;  %2475 = vmatpush3.bf16.msra.mxu0 %v3126_v49  ;;  %v458_v6 = vstv %s1720_s13  ;;  %s1751_s13 = sshll.u32 %s2751_s27, 3 }
  0x7a   : > { %2507 = vmatpush3.bf16.msra.mxu1 %v3126_v49  ;;  %2477 = vmatprep.subr.bf16.mxu0 %v3138_v52  ;;  %vm459_vm2 = vcmp.eq.s32.totalorder %v458_v6, 1  ;;  %s1625_s16 = sadd.s32 %s1751_s13, %s1747_s10  ;;  %s2772_s13 = smov [#allocation3]  }
  0x7b   : > { %2141 = vmatmul.mubr.f32.gmra.mrb[16].mxu0 %v347_v42  ;;  %2509 = vmatprep.subr.bf16.mxu1 %v3138_v52  ;;  %vm460_vm4 = vmand %vm355_vm1, %vm459_vm2  ;;  %v3267_v42 = vsub.s32 2, %v3212_v5  ;;  %s2677_s10 = sshll.u32 %s2772_s13, 4  ;;  %s2678_s10 = int_to_ptr.vmem [resolvable:$false] %s2677_s10 }
  0x7c   : > { %2182 = vmatmul.mubr.f32.gmra.mrb[16].mxu1 %v350_v43  ;;  %vm462_vm7 = vmand %vm360_vm6, %vm459_vm2 }
  0x7d   : > { %2479 = vmatpush3.bf16.msra.mxu0 %v3138_v52  ;;  %v3289_v50 = vrot.slane %v310_v39, %v3267_v42 }
  0x7e   : > { %2511 = vmatpush3.bf16.msra.mxu1 %v3138_v52  ;;  %2481 = vmatprep.subr.bf16.mxu0 %v3150_v55 }
  0x7f   : > { %2513 = vmatprep.subr.bf16.mxu1 %v3150_v55 }
  0x81   : > { %2483 = vmatpush3.bf16.msra.mxu0 %v3150_v55 }
  0x82   : > { %2515 = vmatpush3.bf16.msra.mxu1 %v3150_v55  ;;  %2485 = vmatprep.subr.bf16.mxu0 %v3162_v58 }
  0x83   : > { %2517 = vmatprep.subr.bf16.mxu1 %v3162_v58 }
  0x85   : > { %2487 = vmatpush3.bf16.msra.mxu0 %v3162_v58 }
  0x86   : > { %2519 = vmatpush3.bf16.msra.mxu1 %v3162_v58  ;;  %2489 = vmatprep.subr.bf16.mxu0 %v3170_v61 }
  0x87   : > { %2521 = vmatprep.subr.bf16.mxu1 %v3170_v61 }
  0x89   : > { %2491 = vmatpush3.bf16.msra.mxu0 %v3170_v61 }
  0x8a   : > { %2523 = vmatpush3.bf16.msra.mxu1 %v3170_v61  ;;  %2493 = vmatprep.subr.bf16.mxu0 %v3183_v0 }
  0x8b   : > { %2525 = vmatprep.subr.bf16.mxu1 %v3183_v0 }
  0x8d   : > { %2495 = vmatpush3.bf16.msra.mxu0 %v3183_v0 }
  0x8e   : > { %2527 = vmatpush3.bf16.msra.mxu1 %v3183_v0  ;;  %2497 = vmatprep.subr.bf16.mxu0 %v3195_v3 }
  0x8f   : > { %2529 = vmatprep.subr.bf16.mxu1 %v3195_v3 }
  0x91   : > { %2499 = vmatpush3.bf16.msra.mxu0 %v3195_v3 }
  0x92   : > { %2531 = vmatpush3.bf16.msra.mxu1 %v3195_v3  ;;  %2533 = vmatprep.subr.bf16.mxu0 %v3114_v46 }
  0x93   : > { %2565 = vmatprep.subr.bf16.mxu1 %v3114_v46 }
 0x106   : > { %v436_v10 = vpop.f32.mrb[0].mxu0  ;;  %v541_v11 = vpop.f32.mrb[0].mxu1 }
 0x107   : > { %v437_v12 = vadd.f32 %v3217_v8, %v436_v10  ;;  %v1972_v13 = vpop.f32.mrb[1].mxu0  ;;  %v542_v14 = vadd.f32 %v3217_v8, %v541_v11  ;;  %v2013_v15 = vpop.f32.mrb[1].mxu1 }
 0x108   : > { %v671_v13 = vstv %s1722_s23  ;;  %v3321_v15 = vrot.slane %v311_v48, %v3256_v38  ;;  %s1724_s23 = scalar_select %p882_p1, 0, 1 }
 0x109   : > { %v450_v17 = vmax.f32 %v437_v12, 0.0  ;;  %v555_v18 = vmax.f32 %v542_v14, 0.0  ;;  %vm3323_vm9 = vcmp.eq.s32.totalorder %v671_v13, 1 }
 0x10a   : > { %v441_v19 = vpop.f32.mrb[2].mxu0  ;;  %v546_v20 = vpop.f32.mrb[2].mxu1  ;;  %vm3352_vm11 = vmand %vm355_vm1, %vm3323_vm9 }
 0x10b   : > { %v469_v21 = vsel %vm460_vm4, %v450_v17, 0.0  ;;  %v3236_v22 = vsel %vm566_vm5, %v555_v18, 0.0  ;;  %v442_v23 = vadd.f32 %v3217_v8, %v441_v19  ;;  %v547_v24 = vadd.f32 %v3217_v8, %v546_v20  ;;  %v1975_v25 = vpop.f32.mrb[3].mxu0  ;;  %v2016_v26 = vpop.f32.mrb[3].mxu1  ;;  %vm675_vm13 = vmand %vm360_vm6, %vm3323_vm9 }
 0x10c   : > { %472 = vst [vmem:[#allocation2] sm:$0xff] %v469_v21  ;;  %579 = vst [vmem:[#allocation2 + $0x18] sm:$0xff] %v3236_v22  ;;  %v1022_v56 = vmul.f32 %v3272_v45, %v469_v21  ;;  %v1098_v4 = vmul.f32 %v3300_v54, %v3236_v22  ;;  %v778_v17 = vstv %s1723_s9 }
 0x10d   : > { %v451_v27 = vmax.f32 %v442_v23, 0.0  ;;  %v556_v28 = vmax.f32 %v547_v24, 0.0  ;;  %v3331_v23 = vld [vmem:[%s3683_s3 + $0x8] sm:$0x7]  ;;  %v3334_v24 = vrot.slane %v311_v48, %v3267_v42  ;;  %vm3336_vm10 = vcmp.eq.s32.totalorder %v778_v17, 1 }
 0x10e   : > { %v446_v29 = vpop.f32.mrb[4].mxu0  ;;  %v551_v30 = vpop.f32.mrb[4].mxu1  ;;  %vm780_vm12 = vmand %vm355_vm1, %vm3336_vm10  ;;  %v3413_v25 = vrot.slane %v3331_v23, %v3256_v38 }
 0x10f   : > { %v470_v31 = vsel %vm459_vm2, %v451_v27, 0.0  ;;  %v3245_v32 = vsel %vm3220_vm3, %v556_v28, 0.0  ;;  %v447_v33 = vadd.f32 %v3217_v8, %v446_v29  ;;  %v1978_v34 = vpop.f32.mrb[5].mxu0  ;;  %v552_v35 = vadd.f32 %v3217_v8, %v551_v30  ;;  %v2019_v36 = vpop.f32.mrb[5].mxu1  ;;  %vm782_vm14 = vmand %vm360_vm6, %vm3336_vm10 }
 0x110   : > { %473 = vst [vmem:[#allocation2 + $0x8] sm:$0xff] %v470_v31  ;;  %580 = vst [vmem:[#allocation2 + $0x20] sm:$0xff] %v3245_v32  ;;  %v1023_v62 = vmul.f32 %v3272_v45, %v470_v31  ;;  %v1099_v11 = vmul.f32 %v3300_v54, %v3245_v32  ;;  %v1024_v27 = vmul.f32 %v3272_v45, %v3236_v22 }
 0x111   : > { %v452_v40 = vmax.f32 %v447_v33, 0.0  ;;  %v557_v41 = vmax.f32 %v552_v35, 0.0  ;;  %v1025_v33 = vmul.f32 %v3272_v45, %v3245_v32  ;;  %v3359_v32 = vrot.slane %v3331_v23, %v3253_v37 }
 0x113   : > { %v471_v43 = vsel %vm462_vm7, %v452_v40, 0.0  ;;  %v577_v44 = vsel %vm568_vm8, %v557_v41, 0.0 }
 0x114   : > { %474 = vst [vmem:[#allocation2 + $0x10] sm:$0x3] %v471_v43  ;;  %581 = vst [vmem:[#allocation2 + $0x28] sm:$0x3] %v577_v44 }
 0x117   : > { %v1030_v51 = vld [vmem:[#allocation2 + $0x1] sm:$0xff]  ;;  %v1114_v14 = vld [vmem:[#allocation2 + $0x19] sm:$0xff] }
 0x118   : > { %v1058_v53 = vld [vmem:[#allocation2 + $0x2] sm:$0xff]  ;;  %v1042_v57 = vmul.f32 %v3275_v47, %v1030_v51  ;;  %v1044_v21 = vmul.f32 %v1114_v14, %v3275_v47  ;;  %v1142_v26 = vld [vmem:[#allocation2 + $0x1a] sm:$0xff]  ;;  %v1126_v30 = vmul.f32 %v3321_v15, %v1114_v14 }
 0x119   : > { %v1070_v60 = vmul.f32 %v3289_v50, %v1058_v53  ;;  %v1072_v48 = vmul.f32 %v1142_v26, %v3289_v50 }
 0x11a   : > { %v1050_v59 = vadd.f32 %v1042_v57, %v1022_v56  ;;  %v1052_v44 = vadd.f32 %v1044_v21, %v1024_v27  ;;  %v1154_v56 = vmul.f32 %v3334_v24, %v1142_v26 }
 0x11b   : > { %v1031_v63 = vld [vmem:[#allocation2 + $0x9] sm:$0xff]  ;;  %v1115_v19 = vld [vmem:[#allocation2 + $0x21] sm:$0xff] }
 0x11c   : > { %v1059_v1 = vld [vmem:[#allocation2 + $0xa] sm:$0xff]  ;;  %v1078_v2 = vadd.f32 %v1070_v60, %v1050_v59  ;;  %v1043_v6 = vmul.f32 %v3275_v47, %v1031_v63  ;;  %v1127_v31 = vmul.f32 %v3321_v15, %v1115_v19  ;;  %v1045_v34 = vmul.f32 %v1115_v19, %v3275_v47  ;;  %v1143_v41 = vld [vmem:[#allocation2 + $0x22] sm:$0xff] }
 0x11d   : > { %v1071_v7 = vmul.f32 %v3289_v50, %v1059_v1  ;;  %v1155_v37 = vmul.f32 %v3334_v24, %v1143_v41  ;;  %v1073_v63 = vmul.f32 %v1143_v41, %v3289_v50 }
 0x11e   : > { %v1106_v9 = vadd.f32 %v1098_v4, %v1078_v2  ;;  %v1051_v10 = vadd.f32 %v1043_v6, %v1023_v62  ;;  %v1053_v62 = vadd.f32 %v1045_v34, %v1025_v33 }
 0x120   : > { %v1079_v12 = vadd.f32 %v1071_v7, %v1051_v10  ;;  %v1134_v43 = vadd.f32 %v1126_v30, %v1106_v9 }
 0x122   : > { %v1107_v18 = vadd.f32 %v1099_v11, %v1079_v12  ;;  %v1162_v10 = vadd.f32 %v1154_v56, %v1134_v43  ;;  %v1080_v12 = vadd.f32 %v1072_v48, %v1052_v44  ;;  %v3417_v48 = vrot.slane %v3331_v23, %v3267_v42 }
 0x124   : > { %v1135_v60 = vadd.f32 %v1127_v31, %v1107_v18 }
 0x126   : > { %v648_v28 = vpop.f32.mrb[6].mxu0  ;;  %v755_v29 = vpop.f32.mrb[6].mxu1  ;;  %v1163_v26 = vadd.f32 %v1155_v37, %v1135_v60 }
 0x127   : > { %v649_v35 = vadd.f32 %v3217_v8, %v648_v28  ;;  %v2054_v36 = vpop.f32.mrb[7].mxu0  ;;  %v756_v39 = vadd.f32 %v3217_v8, %v755_v29  ;;  %v2095_v40 = vpop.f32.mrb[7].mxu1  ;;  %v1081_v28 = vadd.f32 %v1073_v63, %v1053_v62  ;;  %v3440_v63 = vld [vmem:[%s3684_s4] ss:$0 sm:$0xff] }
 0x129   : > { %v662_v51 = vmax.f32 %v649_v35, 0.0  ;;  %v769_v53 = vmax.f32 %v756_v39, 0.0 }
 0x12a   : > { %v653_v57 = vpop.f32.mrb[8].mxu0  ;;  %v760_v59 = vpop.f32.mrb[8].mxu1 }
 0x12b   : > { %v682_v1 = vsel %vm3352_vm11, %v662_v51, 0.0  ;;  %v3372_v2 = vsel %vm780_vm12, %v769_v53, 0.0  ;;  %v654_v4 = vadd.f32 %v3217_v8, %v653_v57  ;;  %v2057_v6 = vpop.f32.mrb[9].mxu0  ;;  %v761_v7 = vadd.f32 %v3217_v8, %v760_v59  ;;  %v2098_v9 = vpop.f32.mrb[9].mxu1 }
 0x12c   : > { %686 = vst [vmem:[#allocation2 + $0x30] sm:$0xff] %v682_v1  ;;  %793 = vst [vmem:[#allocation2 + $0x48] sm:$0xff] %v3372_v2  ;;  %v1182_v11 = vmul.f32 %v3359_v32, %v682_v1  ;;  %v1100_v13 = vmul.f32 %v3300_v54, %v682_v1  ;;  %v885_v57 = vstv %s1724_s23  ;;  %v1026_v42 = vmul.f32 %v3272_v45, %v682_v1  ;;  %s1715_s23 = sshll.u32 %s283_s20, 6 }
 0x12d   : > { %v663_v14 = vmax.f32 %v654_v4, 0.0  ;;  %v770_v17 = vmax.f32 %v761_v7, 0.0  ;;  %v1184_v1 = vmul.f32 %v3359_v32, %v3372_v2  ;;  %vm3450_vm15 = vcmp.eq.s32.totalorder %v885_v57, 1  ;;  %s3600_s9 = scalar_lea.vmem [#allocation3], %s1715_s23  ;;  %s3628_s23 = scalar_lea.sflag [#allocation4], %s283_s20 }
 0x12e   : > { %v658_v18 = vpop.f32.mrb[10].mxu0  ;;  %v765_v19 = vpop.f32.mrb[10].mxu1  ;;  %v1190_v21 = vadd.f32 %v1182_v11, %v1162_v10  ;;  %v1108_v27 = vadd.f32 %v1100_v13, %v1080_v12  ;;  %v1102_v10 = vmul.f32 %v3300_v54, %v3372_v2  ;;  %vm3493_vm2 = vmand %vm355_vm1, %vm3450_vm15  ;;  %s1628_s21 = sshll.u32 %s3600_s9, 4  ;;  %s3622_s21 = int_to_ptr.vmem [resolvable:$true] %s1628_s21 }
 0x12f   : > { %v683_v29 = vsel %vm3323_vm9, %v663_v14, 0.0  ;;  %v3391_v30 = vsel %vm3336_vm10, %v770_v17, 0.0  ;;  %v659_v31 = vadd.f32 %v3217_v8, %v658_v18  ;;  %v2060_v33 = vpop.f32.mrb[11].mxu0  ;;  %v766_v34 = vadd.f32 %v3217_v8, %v765_v19  ;;  %v2101_v35 = vpop.f32.mrb[11].mxu1  ;;  %p2680_p10 = scmp.lt.s32.totalorder %s3622_s21, %s2678_s10 }
 0x130   : > { %687 = vst [vmem:[#allocation2 + $0x38] sm:$0xff] %v683_v29  ;;  %794 = vst [vmem:[#allocation2 + $0x50] sm:$0xff] %v3391_v30  ;;  %v1183_v22 = vmul.f32 %v3359_v32, %v683_v29  ;;  %v1101_v20 = vmul.f32 %v3300_v54, %v683_v29  ;;  %v1185_v7 = vmul.f32 %v3359_v32, %v3391_v30 }
 0x131   : > { %v664_v36 = vmax.f32 %v659_v31, 0.0  ;;  %v771_v39 = vmax.f32 %v766_v34, 0.0 }
 0x132   : > { %v1191_v40 = vadd.f32 %v1183_v22, %v1163_v26  ;;  %v1109_v41 = vadd.f32 %v1101_v20, %v1081_v28  ;;  %v1027_v28 = vmul.f32 %v3272_v45, %v683_v29 }
 0x133   : > { %v684_v43 = vsel %vm675_vm13, %v664_v36, 0.0  ;;  %v791_v44 = vsel %vm782_vm14, %v771_v39, 0.0 }
 0x134   : > { %688 = vst [vmem:[#allocation2 + $0x40] sm:$0x3] %v684_v43  ;;  %795 = vst [vmem:[#allocation2 + $0x58] sm:$0x3] %v791_v44 }
 0x137   : > { %v1198_v51 = vld [vmem:[#allocation2 + $0x31] sm:$0xff]  ;;  %v1200_v14 = vld [vmem:[#allocation2 + $0x49] sm:$0xff] }
 0x138   : > { %v1226_v53 = vld [vmem:[#allocation2 + $0x32] sm:$0xff]  ;;  %v1210_v38 = vmul.f32 %v3413_v25, %v1198_v51  ;;  %v1128_v56 = vmul.f32 %v1198_v51, %v3321_v15  ;;  %v1046_v23 = vmul.f32 %v1198_v51, %v3275_v47  ;;  %v1228_v17 = vld [vmem:[#allocation2 + $0x4a] sm:$0xff]  ;;  %v1212_v26 = vmul.f32 %v3413_v25, %v1200_v14 }
 0x139   : > { %v1238_v60 = vmul.f32 %v3417_v48, %v1226_v53  ;;  %v1156_v62 = vmul.f32 %v1226_v53, %v3334_v24  ;;  %v1074_v18 = vmul.f32 %v1226_v53, %v3289_v50  ;;  %v1240_v22 = vmul.f32 %v3417_v48, %v1228_v17 }
 0x13a   : > { %v1218_v59 = vadd.f32 %v1210_v38, %v1190_v21  ;;  %v1136_v37 = vadd.f32 %v1128_v56, %v1108_v27  ;;  %v1054_v9 = vadd.f32 %v1046_v23, %v1026_v42  ;;  %v1048_v56 = vmul.f32 %v1200_v14, %v3275_v47 }
 0x13b   : > { %v1199_v4 = vld [vmem:[#allocation2 + $0x39] sm:$0xff]  ;;  %v992_v23 = vstv %s3464_s18  ;;  %s1748_s18 = sshll.u32 %s1625_s16, 7  ;;  %s2679_s16 = scalar_lea.vmem %s2678_s10, 2048 }
 0x13c   : > { %v1227_v6 = vld [vmem:[#allocation2 + $0x3a] sm:$0xff]  ;;  %v1246_v11 = vadd.f32 %v1238_v60, %v1218_v59  ;;  %v1211_v12 = vmul.f32 %v3413_v25, %v1199_v4  ;;  %v1164_v13 = vadd.f32 %v1156_v62, %v1136_v37  ;;  %v1129_v27 = vmul.f32 %v1199_v4, %v3321_v15  ;;  %v1229_v59 = vld [vmem:[#allocation2 + $0x52] sm:$0xff]  ;;  %s3620_s22 = scalar_lea.hbm %s3687_s7, %s1748_s18 }
 0x13d   : > { %v1239_v21 = vmul.f32 %v3417_v48, %v1227_v6  ;;  %v1082_v35 = vadd.f32 %v1074_v18, %v1054_v9  ;;  %v1157_v36 = vmul.f32 %v1227_v6, %v3334_v24  ;;  %v1047_v39 = vmul.f32 %v1199_v4, %v3275_v47 }
 0x13e   : > { %v1260_v31 = vadd.f32 %v3440_v63, %v1246_v11  ;;  %v1219_v33 = vadd.f32 %v1211_v12, %v1191_v40  ;;  %v1192_v34 = vadd.f32 %v1184_v1, %v1164_v13  ;;  %v1137_v20 = vadd.f32 %v1129_v27, %v1109_v41  ;;  %v1201_v41 = vld [vmem:[#allocation2 + $0x51] sm:$0xff] }
 0x13f   : > { %v1110_v51 = vadd.f32 %v1102_v10, %v1082_v35  ;;  %v1055_v53 = vadd.f32 %v1047_v39, %v1027_v28  ;;  %v1075_v38 = vmul.f32 %v1227_v6, %v3289_v50  ;;  %v1028_v60 = vmul.f32 %v3272_v45, %v3372_v2 }
 0x140   : > { %v1268_v43 = vmax.f32 %v1260_v31, 0.0  ;;  %v1247_v29 = vadd.f32 %v1239_v21, %v1219_v33  ;;  %v1220_v44 = vadd.f32 %v1212_v26, %v1192_v34  ;;  %v1165_v40 = vadd.f32 %v1157_v36, %v1137_v20 }
 0x141   : > { %v1213_v62 = vmul.f32 %v3413_v25, %v1201_v41  ;;  %v1083_v4 = vadd.f32 %v1075_v38, %v1055_v53  ;;  %v1103_v1 = vmul.f32 %v3300_v54, %v3391_v30  ;;  %v1130_v10 = vmul.f32 %v1200_v14, %v3321_v15 }
 0x142   : > { %2216 = vmatprep.mubr.f32.mxu0 %v1268_v43  ;;  %v1261_v57 = vadd.f32 %v3440_v63, %v1247_v29  ;;  %v1248_v42 = vadd.f32 %v1240_v22, %v1220_v44  ;;  %v1193_v37 = vadd.f32 %v1185_v7, %v1165_v40  ;;  %v1076_v11 = vmul.f32 %v1228_v17, %v3289_v50 }
 0x143   : > { %v1241_v13 = vmul.f32 %v3417_v48, %v1229_v59  ;;  %v1111_v18 = vadd.f32 %v1103_v1, %v1083_v4  ;;  %v1056_v21 = vadd.f32 %v1048_v56, %v1028_v60  ;;  %vm3482_vm0 = vcmp.eq.s32.totalorder %v992_v23, 1 }
 0x144   : > { %v1269_v6 = vmax.f32 %v1261_v57, 0.0  ;;  %v1262_v9 = vadd.f32 %v3440_v63, %v1248_v42  ;;  %v1221_v12 = vadd.f32 %v1213_v62, %v1193_v37  ;;  %v1138_v27 = vadd.f32 %v1130_v10, %v1110_v51  ;;  %vm3506_vm3 = vmand %vm355_vm1, %vm3482_vm0 }
 0x145   : > { %v1049_v28 = vmul.f32 %v1201_v41, %v3275_v47  ;;  %v1158_v20 = vmul.f32 %v1228_v17, %v3334_v24  ;;  %v1029_v36 = vmul.f32 %v3272_v45, %v3391_v30  ;;  %v1131_v44 = vmul.f32 %v1201_v41, %v3321_v15  ;;  %vm889_vm1 = vmand %vm360_vm6, %vm3450_vm15 }
 0x146   : > { %v862_v2 = vpop.f32.mrb[12].mxu0  ;;  %2217 = vmatmul.mubr.f32.vlgmr.msra.gmra.mrb[18].mxu0 %v1269_v6  ;;  %v1270_v7 = vmax.f32 %v1262_v9, 0.0  ;;  %v1249_v34 = vadd.f32 %v1241_v13, %v1221_v12  ;;  %v1084_v51 = vadd.f32 %v1076_v11, %v1056_v21  ;;  %v1077_v45 = vmul.f32 %v1229_v59, %v3289_v50  ;;  %vm996_vm4 = vmand %vm360_vm6, %vm3482_vm0 }
 0x147   : > { %v863_v31 = vadd.f32 %v3217_v8, %v862_v2  ;;  %v2136_v14 = vpop.f32.mrb[13].mxu0  ;;  %2535 = vmatpush3.bf16.msra.mxu0 %v3114_v46  ;;  %v969_v33 = vpop.f32.mrb[12].mxu1  ;;  %v1166_v17 = vadd.f32 %v1158_v20, %v1138_v27  ;;  %v1057_v38 = vadd.f32 %v1049_v28, %v1029_v36  ;;  %v1139_v23 = vadd.f32 %v1131_v44, %v1111_v18 }
 0x148   : > { %2251 = vmatprep.mubr.f32.mxu1 %v1270_v7  ;;  %v970_v22 = vadd.f32 %v3217_v8, %v969_v33  ;;  %2537 = vmatprep.subr.bf16.mxu0 %v3126_v49  ;;  %v2177_v47 = vpop.f32.mrb[13].mxu1  ;;  %v1263_v29 = vadd.f32 %v3440_v63, %v1249_v34  ;;  %v1159_v1 = vmul.f32 %v1229_v59, %v3334_v24 }
 0x149   : > { %v876_v39 = vmax.f32 %v863_v31, 0.0  ;;  %v1085_v7 = vadd.f32 %v1077_v45, %v1057_v38 }
 0x14a   : > { %v867_v40 = vpop.f32.mrb[14].mxu0  ;;  %v983_v53 = vmax.f32 %v970_v22, 0.0  ;;  %v1271_v42 = vmax.f32 %v1263_v29, 0.0  ;;  %v1167_v2 = vadd.f32 %v1159_v1, %v1139_v23 }
 0x14b   : > { %v896_v30 = vsel %vm3493_vm2, %v876_v39, 0.0  ;;  %v868_v5 = vadd.f32 %v3217_v8, %v867_v40  ;;  %v2139_v56 = vpop.f32.mrb[15].mxu0  ;;  %2539 = vmatpush3.bf16.msra.mxu0 %v3126_v49  ;;  %v974_v57 = vpop.f32.mrb[14].mxu1 }
 0x14c   : > { %900 = vst [vmem:[#allocation2 + $0x60] sm:$0xff] %v896_v30  ;;  %v3519_v41 = vsel %vm3506_vm3, %v983_v53, 0.0  ;;  %v975_v60 = vadd.f32 %v3217_v8, %v974_v57  ;;  %2541 = vmatprep.subr.bf16.mxu0 %v3138_v52  ;;  %v2180_v50 = vpop.f32.mrb[15].mxu1  ;;  %v1186_v37 = vmul.f32 %v3359_v32, %v896_v30  ;;  %v1104_v62 = vmul.f32 %v3300_v54, %v896_v30 }
 0x14d   : > { %v877_v4 = vmax.f32 %v868_v5, 0.0  ;;  %1007 = vst [vmem:[#allocation2 + $0x78] sm:$0xff] %v3519_v41  ;;  %2252 = vmatmul.mubr.f32.vlgmr.msra.gmra.mrb[18].mxu1 %v1271_v42 }
 0x14e   : > { %v984_v6 = vmax.f32 %v975_v60, 0.0  ;;  %2567 = vmatpush3.bf16.msra.mxu1 %v3114_v46  ;;  %v872_v9 = vpop.f32.mrb[16].mxu0  ;;  %v1194_v10 = vadd.f32 %v1186_v37, %v1166_v17  ;;  %v1112_v11 = vadd.f32 %v1104_v62, %v1084_v51 }
 0x14f   : > { %v897_v12 = vsel %vm3450_vm15, %v877_v4, 0.0  ;;  %v873_v13 = vadd.f32 %v3217_v8, %v872_v9  ;;  %v2142_v18 = vpop.f32.mrb[17].mxu0  ;;  %2543 = vmatpush3.bf16.msra.mxu0 %v3138_v52  ;;  %v979_v21 = vpop.f32.mrb[16].mxu1  ;;  %2569 = vmatprep.subr.bf16.mxu1 %v3126_v49 }
 0x150   : > { %901 = vst [vmem:[#allocation2 + $0x68] sm:$0xff] %v897_v12  ;;  %v3535_v46 = vsel %vm3482_vm0, %v984_v6, 0.0  ;;  %v980_v59 = vadd.f32 %v3217_v8, %v979_v21  ;;  %2545 = vmatprep.subr.bf16.mxu0 %v3150_v55  ;;  %v2183_v27 = vpop.f32.mrb[17].mxu1  ;;  %v1187_v28 = vmul.f32 %v3359_v32, %v897_v12  ;;  %v1105_v31 = vmul.f32 %v3300_v54, %v897_v12  ;;  %v1729_v21 = vld [vmem:[%s2990_s17 + $0x19] sm:$0xff] }
 0x151   : > { %1008 = vst [vmem:[#allocation2 + $0x80] sm:$0xff] %v3535_v46  ;;  %v878_v14 = vmax.f32 %v873_v13, 0.0  ;;  %v1189_v50 = vmul.f32 %v3359_v32, %v3535_v46  ;;  %v1732_v46 = vld [vmem:[%s2990_s17 + $0x39] sm:$0xff] }
 0x152   : > { %v985_v19 = vmax.f32 %v980_v59, 0.0  ;;  %2571 = vmatpush3.bf16.msra.mxu1 %v3126_v49  ;;  %v1195_v33 = vadd.f32 %v1187_v28, %v1167_v2  ;;  %v1113_v8 = vadd.f32 %v1105_v31, %v1085_v7  ;;  %v1731_v28 = vld [vmem:[%s2990_s17 + $0x31] sm:$0xff] }
 0x153   : > { %v898_v34 = vsel %vm889_vm1, %v878_v14, 0.0  ;;  %2547 = vmatpush3.bf16.msra.mxu0 %v3150_v55  ;;  %2573 = vmatprep.subr.bf16.mxu1 %v3138_v52 }
 0x154   : > { %902 = vst [vmem:[#allocation2 + $0x70] sm:$0x3] %v898_v34  ;;  %v1005_v54 = vsel %vm996_vm4, %v985_v19, 0.0  ;;  %2549 = vmatprep.subr.bf16.mxu0 %v3162_v58 }
 0x155   : > { %1009 = vst [vmem:[#allocation2 + $0x88] sm:$0x3] %v1005_v54 }
 0x156   : > { %2575 = vmatpush3.bf16.msra.mxu1 %v3138_v52 }
 0x157   : > { %2551 = vmatpush3.bf16.msra.mxu0 %v3162_v58  ;;  %2577 = vmatprep.subr.bf16.mxu1 %v3150_v55  ;;  %v1202_v16 = vld [vmem:[#allocation2 + $0x61] sm:$0xff] }
 0x158   : > { %v1230_v49 = vld [vmem:[#allocation2 + $0x62] sm:$0xff]  ;;  %2553 = vmatprep.subr.bf16.mxu0 %v3170_v61  ;;  %v1214_v26 = vmul.f32 %v3413_v25, %v1202_v16  ;;  %v1132_v35 = vmul.f32 %v1202_v16, %v3321_v15  ;;  %v1204_v36 = vld [vmem:[#allocation2 + $0x79] sm:$0xff] }
 0x159   : > { %v1242_v47 = vmul.f32 %v3417_v48, %v1230_v49  ;;  %v1160_v52 = vmul.f32 %v1230_v49, %v3334_v24  ;;  %v1216_v40 = vmul.f32 %v3413_v25, %v1204_v36  ;;  %v1232_v53 = vld [vmem:[#allocation2 + $0x7a] sm:$0xff]  ;;  %v1733_v16 = vld [vmem:[%s2990_s17 + $0x49] sm:$0xff] }
 0x15a   : > { %2579 = vmatpush3.bf16.msra.mxu1 %v3150_v55  ;;  %v1222_v22 = vadd.f32 %v1214_v26, %v1194_v10  ;;  %v1140_v20 = vadd.f32 %v1132_v35, %v1112_v11  ;;  %v1188_v55 = vmul.f32 %v3359_v32, %v3519_v41  ;;  %v1735_v36 = vld [vmem:[%s2990_s17 + $0x61] sm:$0xff] }
 0x15b   : > { %2555 = vmatpush3.bf16.msra.mxu0 %v3170_v61  ;;  %2581 = vmatprep.subr.bf16.mxu1 %v3162_v58  ;;  %v1203_v39 = vld [vmem:[#allocation2 + $0x69] sm:$0xff] }
 0x15c   : > { %v1231_v43 = vld [vmem:[#allocation2 + $0x6a] sm:$0xff]  ;;  %2557 = vmatprep.subr.bf16.mxu0 %v3183_v0  ;;  %v1250_v29 = vadd.f32 %v1242_v47, %v1222_v22  ;;  %v1215_v44 = vmul.f32 %v3413_v25, %v1203_v39  ;;  %v1168_v51 = vadd.f32 %v1160_v52, %v1140_v20  ;;  %v1133_v17 = vmul.f32 %v1203_v39, %v3321_v15  ;;  %v1205_v41 = vld [vmem:[#allocation2 + $0x81] sm:$0xff] }
 0x15d   : > { %v1243_v30 = vmul.f32 %v3417_v48, %v1231_v43  ;;  %v1161_v57 = vmul.f32 %v1231_v43, %v3334_v24  ;;  %v1233_v4 = vld [vmem:[#allocation2 + $0x82] sm:$0xff]  ;;  %v1217_v1 = vmul.f32 %v3413_v25, %v1205_v41 }
 0x15e   : > { %2583 = vmatpush3.bf16.msra.mxu1 %v3162_v58  ;;  %v1264_v38 = vadd.f32 %v3440_v63, %v1250_v29  ;;  %v1223_v45 = vadd.f32 %v1215_v44, %v1195_v33  ;;  %v1196_v5 = vadd.f32 %v1188_v55, %v1168_v51  ;;  %v1141_v56 = vadd.f32 %v1133_v17, %v1113_v8  ;;  %v1734_v8 = vld [vmem:[%s2990_s17 + $0x51] sm:$0xff]  ;;  %v1736_v47 = vld [vmem:[%s2990_s17 + $0x69] sm:$0xff] }
 0x15f   : > { %2559 = vmatpush3.bf16.msra.mxu0 %v3183_v0  ;;  %2585 = vmatprep.subr.bf16.mxu1 %v3170_v61  ;;  %v1244_v58 = vmul.f32 %v3417_v48, %v1232_v53 }
 0x160   : > { %2561 = vmatprep.subr.bf16.mxu0 %v3195_v3  ;;  %v1272_v42 = vmax.f32 %v1264_v38, 0.0  ;;  %v1251_v23 = vadd.f32 %v1243_v30, %v1223_v45  ;;  %v1224_v15 = vadd.f32 %v1216_v40, %v1196_v5  ;;  %v1169_v60 = vadd.f32 %v1161_v57, %v1141_v56 }
 0x162   : > { %2587 = vmatpush3.bf16.msra.mxu1 %v3170_v61  ;;  %2286 = vmatprep.mubr.f32.mxu0 %v1272_v42  ;;  %v1265_v37 = vadd.f32 %v3440_v63, %v1251_v23  ;;  %v1252_v62 = vadd.f32 %v1244_v58, %v1224_v15  ;;  %v1197_v24 = vadd.f32 %v1189_v50, %v1169_v60 }
 0x163   : > { %2563 = vmatpush3.bf16.msra.mxu0 %v3195_v3  ;;  %2589 = vmatprep.subr.bf16.mxu1 %v3183_v0  ;;  %v1245_v61 = vmul.f32 %v3417_v48, %v1233_v4  ;;  %v1737_v48 = vld [vmem:[%s3686_s6] ss:$0 sm:$0xff] }
 0x164   : > { %v1273_v6 = vmax.f32 %v1265_v37, 0.0  ;;  %v1266_v9 = vadd.f32 %v3440_v63, %v1252_v62  ;;  %v1225_v32 = vadd.f32 %v1217_v1, %v1197_v24 }
 0x166   : > { %2591 = vmatpush3.bf16.msra.mxu1 %v3183_v0  ;;  %2287 = vmatmul.mubr.f32.vlgmr.msra.gmra.mrb[20].mxu0 %v1273_v6  ;;  %v1274_v10 = vmax.f32 %v1266_v9, 0.0  ;;  %v1253_v11 = vadd.f32 %v1245_v61, %v1225_v32  ;;  %v1730_v0 = vld [vmem:[%s2990_s17 + $0x21] sm:$0xff]  ;;  %s2673_s17 = scalar_lea.vmem %s3622_s21, 1024 }
 0x167   : > { %2593 = vmatprep.subr.bf16.mxu1 %v3195_v3  ;;  %p2674_p6 = scmp.ne.s32.totalorder %s3622_s21, %s2673_s17  ;;  %p2681_p11 = scmp.lt.s32.totalorder %s2679_s16, %s2673_s17 }
 0x168   : > { %2321 = vmatprep.mubr.f32.mxu1 %v1274_v10  ;;  %v1267_v12 = vadd.f32 %v3440_v63, %v1253_v11 }
 0x169   : > { %p2675_p7 = pnand %p2674_p6, %p2866_p3  ;;  %p2682_p12 = por %p2681_p11, %p2680_p10 }
 0x16a   : > { %2595 = vmatpush3.bf16.msra.mxu1 %v3195_v3  ;;  %v1275_v25 = vmax.f32 %v1267_v12, 0.0 }
 0x16b   : > { %p2676_p9 = pneg %p2675_p7 }
 0x16d   : > { %2322 = vmatmul.mubr.f32.vlgmr.msra.gmra.mrb[20].mxu1 %v1275_v25  ;;  %p2683_p13 = pnand %p2682_p12, %p2676_p9 }
 0x219   : > { %v2218_v13 = vpop.f32.mrb[18].mxu0 }
 0x21a   : > { %v1364_v18 = vadd.f32 %v2218_v13, %v1737_v48  ;;  %v1358_v2 = vpop.f32.mrb[19].mxu0 }
 0x21b   : > { %v1359_v7 = vadd.f32 %v1737_v48, %v1358_v2 }
 0x21c   : > { %v1368_v63 = vadd.f32 %v1730_v0, %v1364_v18 }
 0x21d   : > { %v1367_v3 = vadd.f32 %v1729_v21, %v1359_v7 }
 0x21e   : > { %1370 = vst [vmem:[%s3600_s9 + $0x8] sm:$0xff] %v1368_v63 }
 0x21f   : > { %1369 = vst [vmem:[%s3600_s9] sm:$0xff] %v1367_v3 }
 0x220   : > { %v2253_v59 = vpop.f32.mrb[18].mxu1 }
 0x221   : > { %v1443_v27 = vadd.f32 %v2253_v59, %v1737_v48  ;;  %v1437_v31 = vpop.f32.mrb[19].mxu1 }
 0x222   : > { %v1438_v14 = vadd.f32 %v1737_v48, %v1437_v31 }
 0x223   : > { %v1447_v19 = vadd.f32 %v1732_v46, %v1443_v27 }
 0x224   : > { %v1446_v33 = vadd.f32 %v1731_v28, %v1438_v14 }
 0x225   : > { %1739 = vst [vmem:[%s3600_s9 + $0x18] sm:$0xff] %v1447_v19 }
 0x226   : > { %1738 = vst [vmem:[%s3600_s9 + $0x10] sm:$0xff] %v1446_v33 }
 0x239   : > { %v2288_v34 = vpop.f32.mrb[20].mxu0 }
 0x23a   : > { %v1523_v54 = vadd.f32 %v2288_v34, %v1737_v48  ;;  %v1517_v49 = vpop.f32.mrb[21].mxu0 }
 0x23b   : > { %v1518_v26 = vadd.f32 %v1737_v48, %v1517_v49 }
 0x23c   : > { %v1527_v35 = vadd.f32 %v1734_v8, %v1523_v54 }
 0x23d   : > { %v1526_v22 = vadd.f32 %v1733_v16, %v1518_v26 }
 0x23e   : > { %1741 = vst [vmem:[%s3600_s9 + $0x28] sm:$0xff] %v1527_v35 }
 0x23f   : > { %1740 = vst [vmem:[%s3600_s9 + $0x20] sm:$0xff] %v1526_v22 }
 0x240   : > { %v2323_v20 = vpop.f32.mrb[20].mxu1 }
 0x241   : > { %v1603_v52 = vadd.f32 %v2323_v20, %v1737_v48  ;;  %v1597_v39 = vpop.f32.mrb[21].mxu1 }
 0x242   : > { %v1598_v43 = vadd.f32 %v1737_v48, %v1597_v39 }
 0x243   : > { %v1607_v29 = vadd.f32 %v1736_v47, %v1603_v52 }
 0x244   : > { %v1606_v44 = vadd.f32 %v1735_v36, %v1598_v43 }
 0x245   : > { %1743 = vst [vmem:[%s3600_s9 + $0x38] sm:$0xff] %v1607_v29 }
 0x246   : > { %1742 = vst [vmem:[%s3600_s9 + $0x30] sm:$0xff] %v1606_v44 }
 0x247   : > { %2686 = shalt.err (!%p2683_p13)
}
 0x248   : > { %s2687_s20 = scalar_lea.hbm %s3620_s22, 1024  ;;  %s2691_s27 = scalar_lea.hbm %s3687_s7, 8192 }
 0x249   : > { %p2688_p0 = scmp.ne.s32.totalorder %s3620_s22, %s2687_s20  ;;  %p2692_p4 = scmp.lt.u32.totalorder %s3620_s22, %s3687_s7 }
 0x24a   : > { %p2693_p5 = scmp.lt.u32.totalorder %s2691_s27, %s2687_s20  ;;  %p2695_p7 = scmp.lt.u32.totalorder %s2687_s20, %s3620_s22 }
 0x24b   : > { %p2689_p1 = pnand %p2688_p0, %p2866_p3 }
 0x24c   : > { %p2694_p6 = por %p2693_p5, %p2692_p4 }
 0x24d   : > { %p2690_p2 = pneg %p2689_p1 }
 0x24e   : > { %p2696_p9 = por %p2695_p7, %p2694_p6 }
 0x250   : > { %p2697_p10 = pnand %p2696_p9, %p2690_p2 }
 0x252   : > { %2700 = shalt.err (!%p2697_p10)
}
 0x253   : > { %s2773_s17 = smov 128   ;;  %s2774_s10 = smov 8  }
 0x254   : > { %2597 = dma.vmem_to_hbm [thread:$0]  (%p2866_p3), %s3622_s21, 1024, %s3620_s22, %s3628_s23, %s2773_s17, %s2773_s17, %s2774_s10  }
 0x255 PF: > { %p2603_p11 = scmp.ge.s32.totalorder %s2767_s8, 2  ;;  %s1643_s16 = sand.u32 1, %s2739_s24  }
 0x256   : > { %s1644_s20 = scalar_lea.sflag [#allocation4], %s1643_s16 }
 0x257   : > { %p2600_p12 = pnand %p2603_p11, %p2875_p8 }
 0x259   : > { %2734 = dma.done.wait (!%p2600_p12), %s1644_s20, 1024  }
 0x25a   : > { %2736 = vsyncadd (!%p2600_p12), %s1644_s20, 4294966272  ;;  %s20_s8 = sadd.s32 1, %s2767_s8   ;;  %s3714_s24 = smov %s2743_s25 }
 0x25b   : > { %p17_p13 = scmp.ge.s32.totalorder %s20_s8, 10   ;;  %s3715_s25 = smov %s2747_s26 }
 0x25c   : > { %s3716_s26 = smov %s2884_s19  ;;  %s3717_s27 = smov %s2759_s29 }
 0x25d   : > { %s3718_s28 = smov %s2763_s30  ;;  %s3719_s29 = smov %s3722_s11 }
 0x25e   : > { %s3720_s30 = smov %s3726_s12  ;;  %19 = sbr.rel (!%p17_p13) target bundleno = 5 (0x5), region = 93 }
 0x265   :  { %1649 = vsyncpa [#allocation4], 1 }
 0x266   :  { %1651 = vsyncpa [#allocation4 + $0x1], 1 }

</bundles_post_ra>
